<compile_context>
chip_gen: v7x
topology: tpu7x:2x2x1
jax: 0.10.0
libtpu: 0.0.40
codegen_flags: <defaults>
</compile_context>

<pallas_src>
import functools

import jax
import jax.numpy as jnp
from jax import lax
from jax.experimental import pallas as pl
from jax.experimental.pallas import tpu as pltpu

EPS = 1e-5                       # PyTorch BatchNorm2d default eps
LANE = 128                       # TPU lane width — channel / K padding target

# Scoped-VMEM budget: ~3/4 of physical VMEM, capped at 96 MiB.
#   v5e / v6e (128 MiB physical) -> 96 MiB;  v7x (64 MiB physical) -> 48 MiB.
try:
    _VMEM_LIMIT = min(3 * pltpu.get_tpu_info().vmem_capacity_bytes // 4,
                      96 * 1024 * 1024)
except Exception:  # old runtime / non-TPU trace host — safe default
    _VMEM_LIMIT = 32 * 1024 * 1024


# ------------------------------ small helpers -------------------------------

def _round_up(x, m):
    return (x + m - 1) // m * m


def _pad2d(a, rows, cols):
    return jnp.pad(a, ((0, rows - a.shape[0]), (0, cols - a.shape[1])))


def _matmul_tiles(m, c_pad):
    """Pick (tm, tn, m_pad) for the matmul grid.

    tn follows the 256-wide MXU on v6e/v7x when the channel dim allows it.
    tm is as large as possible (<= 512, multiple of 16 for bf16 tiles), but
    split so the parallel grid axes have >= 2 steps (keeps both v7x
    TensorCores busy even when a layer is small)."""
    tn = 256 if c_pad % 256 == 0 else LANE
    tm = min(512, _round_up(m, 16))
    if m >= 32 and (_round_up(m, tm) // tm) * (c_pad // tn) < 2:
        tm = _round_up(pl.cdiv(m, 2), 16)
    m_pad = _round_up(m, tm)
    return tm, tn, m_pad


def _k_tile(k_pad):
    """Deep K tiles amortize per-step overhead / MRF drain.

    Conv K (= kh*kw*cin) is modest, so a single K step is usually best."""
    if k_pad <= 2048:
        return k_pad
    for t in (1024, 512, 256, 128):
        if k_pad % t == 0:
            return t
    return LANE


# --------------------- Pallas kernels: tiled matmul (MXU) ---------------------

def _matmul_stats_kernel(a_ref, w_ref, o_ref, stats_ref, acc_ref):
    """One (tm, tn) output tile; K is the innermost ("arbitrary") grid axis.

    The epilogue (last K step) also emits this tile's per-channel sum and
    sum-of-squares (single (2, tn) store) so BatchNorm statistics never
    require re-reading the conv output from HBM.
    """
    @pl.when(pl.program_id(2) == 0)
    def _init():
        acc_ref[...] = jnp.zeros_like(acc_ref)

    acc_ref[...] += jnp.dot(a_ref[...], w_ref[...],
                            preferred_element_type=jnp.float32)

    @pl.when(pl.program_id(2) == pl.num_programs(2) - 1)
    def _finalize():
        acc = acc_ref[...]
        o_ref[...] = acc.astype(o_ref.dtype)
        stats_ref[0, :, :] = jnp.concatenate(
            [jnp.sum(acc, axis=0, keepdims=True),
             jnp.sum(acc * acc, axis=0, keepdims=True)], axis=0)


def _matmul_kernel(a_ref, w_ref, o_ref, acc_ref):
    """Stats-free variant (used for the 1x1 shortcut conv)."""
    @pl.when(pl.program_id(2) == 0)
    def _init():
        acc_ref[...] = jnp.zeros_like(acc_ref)

    acc_ref[...] += jnp.dot(a_ref[...], w_ref[...],
                            preferred_element_type=jnp.float32)

    @pl.when(pl.program_id(2) == pl.num_programs(2) - 1)
    def _finalize():
        o_ref[...] = acc_ref[...].astype(o_ref.dtype)


def _matmul(a, w, tm, tn, *, with_stats, out_dtype=jnp.bfloat16):
    """a: (M_pad, K_pad) bf16, w: (K_pad, C_pad) bf16 ->
       out (M_pad, C_pad) out_dtype [, stats (M_pad//tm, 2, C_pad) f32]."""
    m_pad, k_pad = a.shape
    c_pad = w.shape[1]
    tk = _k_tile(k_pad)
    grid = (m_pad // tm, c_pad // tn, k_pad // tk)

    a_spec = pl.BlockSpec((tm, tk), lambda i, j, k: (i, k))
    w_spec = pl.BlockSpec((tk, tn), lambda i, j, k: (k, j))
    o_spec = pl.BlockSpec((tm, tn), lambda i, j, k: (i, j))

    if with_stats:
        kernel = _matmul_stats_kernel
        out_specs = [o_spec, pl.BlockSpec((1, 2, tn), lambda i, j, k: (i, 0, j))]
        out_shape = (jax.ShapeDtypeStruct((m_pad, c_pad), out_dtype),
                     jax.ShapeDtypeStruct((grid[0], 2, c_pad), jnp.float32))
    else:
        kernel = _matmul_kernel
        out_specs = o_spec
        out_shape = jax.ShapeDtypeStruct((m_pad, c_pad), out_dtype)

    res = pl.pallas_call(
        kernel,
        grid_spec=pltpu.PrefetchScalarGridSpec(
            num_scalar_prefetch=0,
            grid=grid,
            in_specs=[a_spec, w_spec],
            out_specs=out_specs,
            scratch_shapes=[pltpu.VMEM((tm, tn), jnp.float32)]),
        out_shape=out_shape,
        compiler_params=pltpu.CompilerParams(
            dimension_semantics=("parallel", "parallel", "arbitrary"),
            vmem_limit_bytes=_VMEM_LIMIT),
    )(a, w)
    if with_stats:
        return res
    return res, None


# ------------- Pallas kernels: BN affine (+residual) + ReLU, tiled -----------

def _affine_relu_kernel(x_ref, scale_ref, shift_ref, o_ref):
    x = x_ref[...].astype(jnp.float32)
    o_ref[...] = jnp.maximum(x * scale_ref[...] + shift_ref[...],
                             0.0).astype(o_ref.dtype)


def _affine_add_relu_kernel(x_ref, res_ref, scale_ref, shift_ref, o_ref):
    x = x_ref[...].astype(jnp.float32)
    r = res_ref[...].astype(jnp.float32)
    o_ref[...] = jnp.maximum(x * scale_ref[...] + shift_ref[...] + r,
                             0.0).astype(o_ref.dtype)


def _affine_row_tile(m_pad, c_pad, n_streams):
    """Row tile for the pure-bandwidth affine kernels: as big as a ~16 MiB
    double-buffered budget allows (amortizes per-step overhead), but keep
    >= 2 grid steps when the array allows (both v7x TensorCores)."""
    cap = max(16, (16 * 1024 * 1024) // (2 * n_streams * c_pad * 4))
    tm = 16
    for t in (2048, 1024, 512, 256, 128, 64, 32, 16):
        if t <= cap and m_pad % t == 0:
            tm = t
            break
    if m_pad // tm < 2 and tm >= 32:
        tm //= 2
    return tm


def _affine_call(kernel, x, extras, scale, shift, out_dtype):
    m_pad, c_pad = x.shape
    tm = _affine_row_tile(m_pad, c_pad, 2 + len(extras))
    row_spec = pl.BlockSpec((tm, c_pad), lambda i: (i, 0))
    vec_spec = pl.BlockSpec((1, c_pad), lambda i: (0, 0))
    return pl.pallas_call(
        kernel,
        grid=(m_pad // tm,),
        in_specs=[row_spec] + [row_spec] * len(extras) + [vec_spec, vec_spec],
        out_specs=row_spec,
        out_shape=jax.ShapeDtypeStruct((m_pad, c_pad), out_dtype),
        compiler_params=pltpu.CompilerParams(
            dimension_semantics=("parallel",),
            vmem_limit_bytes=_VMEM_LIMIT),
    )(x, *extras, scale, shift)


# ----------------------------- conv via im2col -------------------------------

def conv2d_pallas(x_nhwc, w_oihw, stride, pad, *, with_stats=True,
                  out_dtype=jnp.bfloat16):
    """Bias-free Conv2d = bf16 im2col + tiled Pallas matmul (optionally with
    fused per-channel BN statistics).

    The activation's channel dim may already be zero-padded past the weight's
    input channels (weight rows for the padded channels are zero-filled).
    Returns: out (M_pad, C_pad), stats (M_pad//tm, 2, C_pad) f32 or None,
             (N, Ho, Wo, C_pad), M_real.
    """
    n, h, w_, cin = x_nhwc.shape
    cout, w_cin, kh, kw = w_oihw.shape

    # weight -> (kh*kw*cin, cout), tap-major / channel-minor (matches im2col).
    w_mat = jnp.transpose(w_oihw, (2, 3, 1, 0))            # (kh, kw, w_cin, cout)
    if w_cin != cin:                                       # channel-padded activation
        w_mat = jnp.pad(w_mat, ((0, 0), (0, 0), (0, cin - w_cin), (0, 0)))
    w_mat = w_mat.reshape(kh * kw * cin, cout)

    # Spatial zero-pad + bf16 cast in ONE pass over the (small) input so the
    # 9x im2col materialization below is already half-width.
    xp = jnp.pad(x_nhwc.astype(jnp.bfloat16),
                 ((0, 0), (pad, pad), (pad, pad), (0, 0)))
    ho = (h + 2 * pad - kh) // stride + 1
    wo = (w_ + 2 * pad - kw) // stride + 1
    taps = [xp[:, i:i + stride * ho:stride, j:j + stride * wo:stride, :]
            for i in range(kh) for j in range(kw)]
    patches = jnp.concatenate(taps, axis=-1).reshape(n * ho * wo, kh * kw * cin)

    m = n * ho * wo
    c_pad = _round_up(cout, LANE)
    tm, tn, m_pad = _matmul_tiles(m, c_pad)
    k_pad = _round_up(kh * kw * cin, LANE)
    a16 = _pad2d(patches, m_pad, k_pad)                    # already bf16
    w16 = _pad2d(w_mat, k_pad, c_pad).astype(jnp.bfloat16)
    out, stats = _matmul(a16, w16, tm, tn,
                         with_stats=with_stats, out_dtype=out_dtype)
    return out, stats, (n, ho, wo, c_pad), m


def _bn_scale_shift(stats, m_real, gamma, beta, extra_bias=None):
    """Fold train-mode BatchNorm into per-channel scale/shift (single-pass var).

    Zero-padded channels get gamma = beta = 0 -> scale = shift = 0 (inert).
    Padded / zero M rows contribute 0 to both sums, so dividing by the real M
    keeps the statistics exact.
    """
    c_pad = stats.shape[-1]
    s = jnp.sum(stats, axis=0)                    # (2, C_pad): [sum, sum-of-squares]
    mean = s[0] / m_real
    var = jnp.maximum(s[1] / m_real - mean * mean, 0.0)
    g = jnp.pad(gamma, (0, c_pad - gamma.shape[0]))
    b = jnp.pad(beta, (0, c_pad - beta.shape[0]))
    scale = g * lax.rsqrt(var + EPS)
    shift = b - mean * scale
    if extra_bias is not None:                    # conv3 bias folded into BN2 shift
        shift = shift + jnp.pad(extra_bias, (0, c_pad - extra_bias.shape[0]))
    return scale.reshape(1, c_pad), shift.reshape(1, c_pad)


# ----------------------------- Residual forward ------------------------------

def residual_forward(x_nchw, p, use_1x1conv=True, strides=2):
    cout = p["w1"].shape[0]
    x = jnp.transpose(x_nchw, (0, 2, 3, 1)).astype(jnp.float32)   # NCHW -> NHWC

    # conv1 (3x3, stride, pad 1) with fused BN1 stats; then BN1 affine + ReLU.
    # (conv1/conv2 biases are dropped: train-mode BN cancels them exactly.)
    y1, st1, (n, ho, wo, c_pad), m = conv2d_pallas(x, p["w1"], strides, 1)
    scale1, shift1 = _bn_scale_shift(st1, m, p["g1"], p["be1"])
    h1 = _affine_call(_affine_relu_kernel, y1, (), scale1, shift1,
                      jnp.bfloat16)                                # bf16 intermediate

    # conv2 (3x3, stride 1, pad 1) with fused BN2 stats.
    h1_nhwc = h1[:m].reshape(n, ho, wo, c_pad)
    y2, st2, _, m2 = conv2d_pallas(h1_nhwc, p["w2"], 1, 1)

    # shortcut
    if use_1x1conv:
        # stats-free matmul; conv3's bias is folded into the BN2 shift below.
        res, _, _, _ = conv2d_pallas(x, p["w3"], strides, 0, with_stats=False)
        extra_bias = p["b3"]
    else:
        if strides != 1 or x.shape[-1] != cout:
            raise ValueError("use_1x1conv=False requires strides == 1 and "
                             "input_channels == num_channels")
        res = _pad2d(x.reshape(-1, x.shape[-1]),
                     y2.shape[0], y2.shape[1]).astype(jnp.bfloat16)
        extra_bias = None
    if res.shape != y2.shape:                      # defensive: align padded shapes
        res = _pad2d(res[:y2.shape[0], :y2.shape[1]], y2.shape[0], y2.shape[1])

    # BN2 affine + residual add + ReLU, fused in one row-tiled kernel.
    scale2, shift2 = _bn_scale_shift(st2, m2, p["g2"], p["be2"], extra_bias)
    out = _affine_call(_affine_add_relu_kernel, y2, (res,), scale2, shift2,
                       jnp.float32)

    out = out[:m, :cout].reshape(n, ho, wo, cout)
    return jnp.transpose(out, (0, 3, 1, 2))                       # back to NCHW


# ----------------------------- pure-JAX reference ----------------------------

def _conv_ref(x, w, b, stride, pad, conv_dtype=jnp.float32):
    y = lax.conv_general_dilated(
        x.astype(conv_dtype), w.astype(conv_dtype), (stride, stride),
        ((pad, pad), (pad, pad)), dimension_numbers=("NCHW", "OIHW", "NCHW"),
        preferred_element_type=jnp.float32)
    return y + b.reshape(1, -1, 1, 1)


def _bn_ref(x, g, be):
    mean = jnp.mean(x, axis=(0, 2, 3), keepdims=True)
    var = jnp.mean((x - mean) ** 2, axis=(0, 2, 3), keepdims=True)
    return (x - mean) * lax.rsqrt(var + EPS) * g.reshape(1, -1, 1, 1) \
        + be.reshape(1, -1, 1, 1)


def residual_reference(x, p, strides=2, conv_dtype=jnp.float32):
    y = jax.nn.relu(_bn_ref(_conv_ref(x, p["w1"], p["b1"], strides, 1, conv_dtype),
                            p["g1"], p["be1"]))
    y = _bn_ref(_conv_ref(y, p["w2"], p["b2"], 1, 1, conv_dtype), p["g2"], p["be2"])
    sc = _conv_ref(x, p["w3"], p["b3"], strides, 0, conv_dtype)
    return jax.nn.relu(y + sc)


# ----------------------------------- main -------------------------------------

if __name__ == "__main__":
    Cin, Cout, S, N, strides = 4, 8, 16, 2, 2

    key = jax.random.PRNGKey(0)
    ks = jax.random.split(key, 11)
    params = dict(
        w1=0.1 * jax.random.normal(ks[0], (Cout, Cin, 3, 3), jnp.float32),
        b1=0.05 * jax.random.normal(ks[1], (Cout,), jnp.float32),
        w2=0.1 * jax.random.normal(ks[2], (Cout, Cout, 3, 3), jnp.float32),
        b2=0.05 * jax.random.normal(ks[3], (Cout,), jnp.float32),
        w3=0.1 * jax.random.normal(ks[4], (Cout, Cin, 1, 1), jnp.float32),
        b3=0.05 * jax.random.normal(ks[5], (Cout,), jnp.float32),
        g1=1.0 + 0.1 * jax.random.normal(ks[6], (Cout,), jnp.float32),
        be1=0.1 * jax.random.normal(ks[7], (Cout,), jnp.float32),
        g2=1.0 + 0.1 * jax.random.normal(ks[8], (Cout,), jnp.float32),
        be2=0.1 * jax.random.normal(ks[9], (Cout,), jnp.float32),
    )
    x = jax.random.uniform(ks[10], (N, Cin, S, S), jnp.float32)   # NCHW, like PyTorch

    fwd = jax.jit(functools.partial(residual_forward,
                                    use_1x1conv=True, strides=strides))
    out = jax.block_until_ready(fwd(x, params))

    assert out.shape == (N, Cout, S // strides, S // strides), out.shape

    # Check vs a reference matching the kernel's MXU precision (conv inputs in
    # bf16, f32 accumulation); intermediates are also stored in bf16, hence the
    # slightly wider tolerance than a pure-f32 comparison.
    ref_bf16 = residual_reference(x, params, strides=strides,
                                  conv_dtype=jnp.bfloat16)
    assert jnp.allclose(out, ref_bf16, rtol=3e-2, atol=3e-2), \
        float(jnp.max(jnp.abs(out - ref_bf16)))

    # Ballpark check vs the pure-f32 PyTorch semantics; the only deviation is
    # bf16 rounding (standard TPU mixed precision).
    ref_f32 = residual_reference(x, params, strides=strides,
                                 conv_dtype=jnp.float32)
    assert jnp.allclose(out, ref_f32, rtol=1e-1, atol=1e-1), \
        float(jnp.max(jnp.abs(out - ref_f32)))

    print("KERNEL_OK")
</pallas_src>

<mosaic_0001>
module attributes {stable_mosaic.version = 11 : i64} {
  func.func @_matmul_stats_kernel(%arg0: i32, %arg1: i32, %arg2: i32, %arg3: memref<64x128xbf16, #tpu.memory_space<vmem>>, %arg4: memref<128x128xbf16, #tpu.memory_space<vmem>>, %arg5: memref<64x128xbf16, #tpu.memory_space<vmem>>, %arg6: memref<1x2x128xf32, #tpu.memory_space<vmem>>, %arg7: memref<64x128xf32, #tpu.memory_space<vmem>>) attributes {dimension_semantics = [#tpu.dimension_semantics<parallel>, #tpu.dimension_semantics<parallel>, #tpu.dimension_semantics<arbitrary>], iteration_bounds = array<i64: 2, 1, 1>, scalar_prefetch = 0 : i64, scratch_operands = 1 : i64, tpu.core_type = #tpu.core_type<tc>, window_params = [{transform_indices = @transform_0, window_bounds = array<i64: 64, 128>}, {transform_indices = @transform_1, window_bounds = array<i64: 128, 128>}, {transform_indices = @transform_2, window_bounds = array<i64: 64, 128>}, {transform_indices = @transform_3, window_bounds = array<i64: 1, 2, 128>}]} {
    %c0_i32 = arith.constant 0 : i32
    %0 = arith.cmpi eq, %arg2, %c0_i32 : i32
    %1 = arith.extui %0 : i1 to i32
    %c0_i32_0 = arith.constant 0 : i32
    %2 = arith.cmpi ne, %1, %c0_i32_0 : i32
    scf.if %2 {
      %cst_10 = arith.constant 0.000000e+00 : f32
      %12 = vector.broadcast %cst_10 : f32 to vector<64x128xf32>
      %c0_11 = arith.constant 0 : index
      %c0_12 = arith.constant 0 : index
      %13 = vector.load %arg7[%c0_11, %c0_12] : memref<64x128xf32, #tpu.memory_space<vmem>>, vector<64x128xf32>
      tpu.vector_store %arg7[%c0_11, %c0_12], %12 {strides = array<i32>} : memref<64x128xf32, #tpu.memory_space<vmem>>, vector<64x128xf32>,
    } else {
    }
    %c0 = arith.constant 0 : index
    %c0_1 = arith.constant 0 : index
    %3 = vector.load %arg7[%c0, %c0_1] : memref<64x128xf32, #tpu.memory_space<vmem>>, vector<64x128xf32>
    %c0_2 = arith.constant 0 : index
    %c0_3 = arith.constant 0 : index
    %4 = vector.load %arg3[%c0_2, %c0_3] : memref<64x128xbf16, #tpu.memory_space<vmem>>, vector<64x128xbf16>
    %c0_4 = arith.constant 0 : index
    %c0_5 = arith.constant 0 : index
    %5 = vector.load %arg4[%c0_4, %c0_5] : memref<128x128xbf16, #tpu.memory_space<vmem>>, vector<128x128xbf16>
    %cst = arith.constant dense<0.000000e+00> : vector<64x128xf32>
    %6 = tpu.matmul %4, %5, %cst {dimension_numbers = #tpu.dot_dimension_numbers<[1], [0], [0], [1], [0, 0, 1, 1], [], []>} : vector<64x128xbf16>, vector<128x128xbf16>, vector<64x128xf32> -> vector<64x128xf32>
    %7 = arith.addf %3, %6 : vector<64x128xf32>
    %c0_6 = arith.constant 0 : index
    %c0_7 = arith.constant 0 : index
    %8 = vector.load %arg7[%c0_6, %c0_7] : memref<64x128xf32, #tpu.memory_space<vmem>>, vector<64x128xf32>
    tpu.vector_store %arg7[%c0_6, %c0_7], %7 {strides = array<i32>} : memref<64x128xf32, #tpu.memory_space<vmem>>, vector<64x128xf32>,
    %c0_i32_8 = arith.constant 0 : i32
    %9 = arith.cmpi eq, %arg2, %c0_i32_8 : i32
    %10 = arith.extui %9 : i1 to i32
    %c0_i32_9 = arith.constant 0 : i32
    %11 = arith.cmpi ne, %10, %c0_i32_9 : i32
    scf.if %11 {
      %c0_10 = arith.constant 0 : index
      %c0_11 = arith.constant 0 : index
      %12 = vector.load %arg7[%c0_10, %c0_11] : memref<64x128xf32, #tpu.memory_space<vmem>>, vector<64x128xf32>
      %13 = arith.truncf %12 : vector<64x128xf32> to vector<64x128xbf16>
      %c0_12 = arith.constant 0 : index
      %c0_13 = arith.constant 0 : index
      %14 = vector.load %arg5[%c0_12, %c0_13] : memref<64x128xbf16, #tpu.memory_space<vmem>>, vector<64x128xbf16>
      tpu.vector_store %arg5[%c0_12, %c0_13], %13 {strides = array<i32>} : memref<64x128xbf16, #tpu.memory_space<vmem>>, vector<64x128xbf16>,
      %cst_14 = arith.constant dense<0.000000e+00> : vector<128xf32>
      %15 = vector.multi_reduction <add>, %12, %cst_14 [0] : vector<64x128xf32> to vector<128xf32>
      %16 = vector.shape_cast %15 : vector<128xf32> to vector<1x128xf32>
      %17 = arith.mulf %12, %12 : vector<64x128xf32>
      %cst_15 = arith.constant dense<0.000000e+00> : vector<128xf32>
      %18 = vector.multi_reduction <add>, %17, %cst_15 [0] : vector<64x128xf32> to vector<128xf32>
      %19 = vector.shape_cast %18 : vector<128xf32> to vector<1x128xf32>
      %20 = tpu.concatenate %16, %19 in 0 : vector<1x128xf32>, vector<1x128xf32> -> vector<2x128xf32>
      %c0_16 = arith.constant 0 : index
      %c0_17 = arith.constant 0 : index
      %c0_18 = arith.constant 0 : index
      %21 = vector.load %arg6[%c0_16, %c0_17, %c0_18] : memref<1x2x128xf32, #tpu.memory_space<vmem>>, vector<1x2x128xf32>
      %22 = vector.shape_cast %21 : vector<1x2x128xf32> to vector<2x128xf32>
      %23 = vector.shape_cast %20 : vector<2x128xf32> to vector<1x2x128xf32>
      tpu.vector_store %arg6[%c0_16, %c0_17, %c0_18], %23 {strides = array<i32>} : memref<1x2x128xf32, #tpu.memory_space<vmem>>, vector<1x2x128xf32>,
    } else {
    }
    return
  }
  func.func @transform_0(%arg0: i32, %arg1: i32, %arg2: i32) -> (i32, i32) {
    %c0_i32 = arith.constant 0 : i32
    return %arg0, %arg2 : i32, i32
  }
  func.func @transform_1(%arg0: i32, %arg1: i32, %arg2: i32) -> (i32, i32) {
    %c0_i32 = arith.constant 0 : i32
    return %arg2, %arg1 : i32, i32
  }
  func.func @transform_2(%arg0: i32, %arg1: i32, %arg2: i32) -> (i32, i32) {
    %c0_i32 = arith.constant 0 : i32
    return %arg0, %arg1 : i32, i32
  }
  func.func @transform_3(%arg0: i32, %arg1: i32, %arg2: i32) -> (i32, i32, i32) {
    %c0_i32 = arith.constant 0 : i32
    %c0_i32_0 = arith.constant 0 : i32
    return %arg0, %c0_i32, %arg1 : i32, i32, i32
  }
}

module attributes {stable_mosaic.version = 11 : i64} {
  func.func @_affine_relu_kernel(%arg0: i32, %arg1: memref<64x128xbf16, #tpu.memory_space<vmem>>, %arg2: memref<1x128xf32, #tpu.memory_space<vmem>>, %arg3: memref<1x128xf32, #tpu.memory_space<vmem>>, %arg4: memref<64x128xbf16, #tpu.memory_space<vmem>>) attributes {dimension_semantics = [#tpu.dimension_semantics<parallel>], iteration_bounds = array<i64: 2>, scalar_prefetch = 0 : i64, scratch_operands = 0 : i64, tpu.core_type = #tpu.core_type<tc>, window_params = [{transform_indices = @transform_0, window_bounds = array<i64: 64, 128>}, {pipeline_mode = #tpu.pipeline_mode<synchronous>, transform_indices = @transform_1, window_bounds = array<i64: 1, 128>}, {pipeline_mode = #tpu.pipeline_mode<synchronous>, transform_indices = @transform_2, window_bounds = array<i64: 1, 128>}, {transform_indices = @transform_3, window_bounds = array<i64: 64, 128>}]} {
    %c0 = arith.constant 0 : index
    %c0_0 = arith.constant 0 : index
    %0 = vector.load %arg1[%c0, %c0_0] : memref<64x128xbf16, #tpu.memory_space<vmem>>, vector<64x128xbf16>
    %1 = arith.extf %0 : vector<64x128xbf16> to vector<64x128xf32>
    %c0_1 = arith.constant 0 : index
    %c0_2 = arith.constant 0 : index
    %2 = vector.load %arg2[%c0_1, %c0_2] : memref<1x128xf32, #tpu.memory_space<vmem>>, vector<1x128xf32>
    %3 = vector.broadcast %2 : vector<1x128xf32> to vector<64x128xf32>
    %4 = arith.mulf %1, %3 : vector<64x128xf32>
    %c0_3 = arith.constant 0 : index
    %c0_4 = arith.constant 0 : index
    %5 = vector.load %arg3[%c0_3, %c0_4] : memref<1x128xf32, #tpu.memory_space<vmem>>, vector<1x128xf32>
    %6 = vector.broadcast %5 : vector<1x128xf32> to vector<64x128xf32>
    %7 = arith.addf %4, %6 : vector<64x128xf32>
    %cst = arith.constant 0.000000e+00 : f32
    %8 = vector.broadcast %cst : f32 to vector<64x128xf32>
    %9 = arith.maximumf %7, %8 : vector<64x128xf32>
    %10 = arith.truncf %9 : vector<64x128xf32> to vector<64x128xbf16>
    %c0_5 = arith.constant 0 : index
    %c0_6 = arith.constant 0 : index
    %11 = vector.load %arg4[%c0_5, %c0_6] : memref<64x128xbf16, #tpu.memory_space<vmem>>, vector<64x128xbf16>
    tpu.vector_store %arg4[%c0_5, %c0_6], %10 {strides = array<i32>} : memref<64x128xbf16, #tpu.memory_space<vmem>>, vector<64x128xbf16>,
    return
  }
  func.func @transform_0(%arg0: i32) -> (i32, i32) {
    %c0_i32 = arith.constant 0 : i32
    %c0_i32_0 = arith.constant 0 : i32
    return %arg0, %c0_i32 : i32, i32
  }
  func.func @transform_1(%arg0: i32) -> (i32, i32) {
    %c0_i32 = arith.constant 0 : i32
    %c0_i32_0 = arith.constant 0 : i32
    %c0_i32_1 = arith.constant 0 : i32
    return %c0_i32, %c0_i32_0 : i32, i32
  }
  func.func @transform_2(%arg0: i32) -> (i32, i32) {
    %c0_i32 = arith.constant 0 : i32
    %c0_i32_0 = arith.constant 0 : i32
    %c0_i32_1 = arith.constant 0 : i32
    return %c0_i32, %c0_i32_0 : i32, i32
  }
  func.func @transform_3(%arg0: i32) -> (i32, i32) {
    %c0_i32 = arith.constant 0 : i32
    %c0_i32_0 = arith.constant 0 : i32
    return %arg0, %c0_i32 : i32, i32
  }
}

module attributes {stable_mosaic.version = 11 : i64} {
  func.func @_matmul_stats_kernel(%arg0: i32, %arg1: i32, %arg2: i32, %arg3: memref<64x1152xbf16, #tpu.memory_space<vmem>>, %arg4: memref<1152x128xbf16, #tpu.memory_space<vmem>>, %arg5: memref<64x128xbf16, #tpu.memory_space<vmem>>, %arg6: memref<1x2x128xf32, #tpu.memory_space<vmem>>, %arg7: memref<64x128xf32, #tpu.memory_space<vmem>>) attributes {dimension_semantics = [#tpu.dimension_semantics<parallel>, #tpu.dimension_semantics<parallel>, #tpu.dimension_semantics<arbitrary>], iteration_bounds = array<i64: 2, 1, 1>, scalar_prefetch = 0 : i64, scratch_operands = 1 : i64, tpu.core_type = #tpu.core_type<tc>, window_params = [{transform_indices = @transform_0, window_bounds = array<i64: 64, 1152>}, {transform_indices = @transform_1, window_bounds = array<i64: 1152, 128>}, {transform_indices = @transform_2, window_bounds = array<i64: 64, 128>}, {transform_indices = @transform_3, window_bounds = array<i64: 1, 2, 128>}]} {
    %c0_i32 = arith.constant 0 : i32
    %0 = arith.cmpi eq, %arg2, %c0_i32 : i32
    %1 = arith.extui %0 : i1 to i32
    %c0_i32_0 = arith.constant 0 : i32
    %2 = arith.cmpi ne, %1, %c0_i32_0 : i32
    scf.if %2 {
      %cst_10 = arith.constant 0.000000e+00 : f32
      %12 = vector.broadcast %cst_10 : f32 to vector<64x128xf32>
      %c0_11 = arith.constant 0 : index
      %c0_12 = arith.constant 0 : index
      %13 = vector.load %arg7[%c0_11, %c0_12] : memref<64x128xf32, #tpu.memory_space<vmem>>, vector<64x128xf32>
      tpu.vector_store %arg7[%c0_11, %c0_12], %12 {strides = array<i32>} : memref<64x128xf32, #tpu.memory_space<vmem>>, vector<64x128xf32>,
    } else {
    }
    %c0 = arith.constant 0 : index
    %c0_1 = arith.constant 0 : index
    %3 = vector.load %arg7[%c0, %c0_1] : memref<64x128xf32, #tpu.memory_space<vmem>>, vector<64x128xf32>
    %c0_2 = arith.constant 0 : index
    %c0_3 = arith.constant 0 : index
    %4 = vector.load %arg3[%c0_2, %c0_3] : memref<64x1152xbf16, #tpu.memory_space<vmem>>, vector<64x1152xbf16>
    %c0_4 = arith.constant 0 : index
    %c0_5 = arith.constant 0 : index
    %5 = vector.load %arg4[%c0_4, %c0_5] : memref<1152x128xbf16, #tpu.memory_space<vmem>>, vector<1152x128xbf16>
    %cst = arith.constant dense<0.000000e+00> : vector<64x128xf32>
    %6 = tpu.matmul %4, %5, %cst {dimension_numbers = #tpu.dot_dimension_numbers<[1], [0], [0], [1], [0, 0, 1, 1], [], []>} : vector<64x1152xbf16>, vector<1152x128xbf16>, vector<64x128xf32> -> vector<64x128xf32>
    %7 = arith.addf %3, %6 : vector<64x128xf32>
    %c0_6 = arith.constant 0 : index
    %c0_7 = arith.constant 0 : index
    %8 = vector.load %arg7[%c0_6, %c0_7] : memref<64x128xf32, #tpu.memory_space<vmem>>, vector<64x128xf32>
    tpu.vector_store %arg7[%c0_6, %c0_7], %7 {strides = array<i32>} : memref<64x128xf32, #tpu.memory_space<vmem>>, vector<64x128xf32>,
    %c0_i32_8 = arith.constant 0 : i32
    %9 = arith.cmpi eq, %arg2, %c0_i32_8 : i32
    %10 = arith.extui %9 : i1 to i32
    %c0_i32_9 = arith.constant 0 : i32
    %11 = arith.cmpi ne, %10, %c0_i32_9 : i32
    scf.if %11 {
      %c0_10 = arith.constant 0 : index
      %c0_11 = arith.constant 0 : index
      %12 = vector.load %arg7[%c0_10, %c0_11] : memref<64x128xf32, #tpu.memory_space<vmem>>, vector<64x128xf32>
      %13 = arith.truncf %12 : vector<64x128xf32> to vector<64x128xbf16>
      %c0_12 = arith.constant 0 : index
      %c0_13 = arith.constant 0 : index
      %14 = vector.load %arg5[%c0_12, %c0_13] : memref<64x128xbf16, #tpu.memory_space<vmem>>, vector<64x128xbf16>
      tpu.vector_store %arg5[%c0_12, %c0_13], %13 {strides = array<i32>} : memref<64x128xbf16, #tpu.memory_space<vmem>>, vector<64x128xbf16>,
      %cst_14 = arith.constant dense<0.000000e+00> : vector<128xf32>
      %15 = vector.multi_reduction <add>, %12, %cst_14 [0] : vector<64x128xf32> to vector<128xf32>
      %16 = vector.shape_cast %15 : vector<128xf32> to vector<1x128xf32>
      %17 = arith.mulf %12, %12 : vector<64x128xf32>
      %cst_15 = arith.constant dense<0.000000e+00> : vector<128xf32>
      %18 = vector.multi_reduction <add>, %17, %cst_15 [0] : vector<64x128xf32> to vector<128xf32>
      %19 = vector.shape_cast %18 : vector<128xf32> to vector<1x128xf32>
      %20 = tpu.concatenate %16, %19 in 0 : vector<1x128xf32>, vector<1x128xf32> -> vector<2x128xf32>
      %c0_16 = arith.constant 0 : index
      %c0_17 = arith.constant 0 : index
      %c0_18 = arith.constant 0 : index
      %21 = vector.load %arg6[%c0_16, %c0_17, %c0_18] : memref<1x2x128xf32, #tpu.memory_space<vmem>>, vector<1x2x128xf32>
      %22 = vector.shape_cast %21 : vector<1x2x128xf32> to vector<2x128xf32>
      %23 = vector.shape_cast %20 : vector<2x128xf32> to vector<1x2x128xf32>
      tpu.vector_store %arg6[%c0_16, %c0_17, %c0_18], %23 {strides = array<i32>} : memref<1x2x128xf32, #tpu.memory_space<vmem>>, vector<1x2x128xf32>,
    } else {
    }
    return
  }
  func.func @transform_0(%arg0: i32, %arg1: i32, %arg2: i32) -> (i32, i32) {
    %c0_i32 = arith.constant 0 : i32
    return %arg0, %arg2 : i32, i32
  }
  func.func @transform_1(%arg0: i32, %arg1: i32, %arg2: i32) -> (i32, i32) {
    %c0_i32 = arith.constant 0 : i32
    return %arg2, %arg1 : i32, i32
  }
  func.func @transform_2(%arg0: i32, %arg1: i32, %arg2: i32) -> (i32, i32) {
    %c0_i32 = arith.constant 0 : i32
    return %arg0, %arg1 : i32, i32
  }
  func.func @transform_3(%arg0: i32, %arg1: i32, %arg2: i32) -> (i32, i32, i32) {
    %c0_i32 = arith.constant 0 : i32
    %c0_i32_0 = arith.constant 0 : i32
    return %arg0, %c0_i32, %arg1 : i32, i32, i32
  }
}

module attributes {stable_mosaic.version = 11 : i64} {
  func.func @_affine_add_relu_kernel(%arg0: i32, %arg1: memref<64x128xbf16, #tpu.memory_space<vmem>>, %arg2: memref<64x128xbf16, #tpu.memory_space<vmem>>, %arg3: memref<1x128xf32, #tpu.memory_space<vmem>>, %arg4: memref<1x128xf32, #tpu.memory_space<vmem>>, %arg5: memref<64x128xf32, #tpu.memory_space<vmem>>) attributes {dimension_semantics = [#tpu.dimension_semantics<parallel>], iteration_bounds = array<i64: 2>, scalar_prefetch = 0 : i64, scratch_operands = 0 : i64, tpu.core_type = #tpu.core_type<tc>, window_params = [{transform_indices = @transform_0, window_bounds = array<i64: 64, 128>}, {transform_indices = @transform_1, window_bounds = array<i64: 64, 128>}, {pipeline_mode = #tpu.pipeline_mode<synchronous>, transform_indices = @transform_2, window_bounds = array<i64: 1, 128>}, {pipeline_mode = #tpu.pipeline_mode<synchronous>, transform_indices = @transform_3, window_bounds = array<i64: 1, 128>}, {transform_indices = @transform_4, window_bounds = array<i64: 64, 128>}]} {
    %c0 = arith.constant 0 : index
    %c0_0 = arith.constant 0 : index
    %0 = vector.load %arg1[%c0, %c0_0] : memref<64x128xbf16, #tpu.memory_space<vmem>>, vector<64x128xbf16>
    %1 = arith.extf %0 : vector<64x128xbf16> to vector<64x128xf32>
    %c0_1 = arith.constant 0 : index
    %c0_2 = arith.constant 0 : index
    %2 = vector.load %arg2[%c0_1, %c0_2] : memref<64x128xbf16, #tpu.memory_space<vmem>>, vector<64x128xbf16>
    %3 = arith.extf %2 : vector<64x128xbf16> to vector<64x128xf32>
    %c0_3 = arith.constant 0 : index
    %c0_4 = arith.constant 0 : index
    %4 = vector.load %arg3[%c0_3, %c0_4] : memref<1x128xf32, #tpu.memory_space<vmem>>, vector<1x128xf32>
    %5 = vector.broadcast %4 : vector<1x128xf32> to vector<64x128xf32>
    %6 = arith.mulf %1, %5 : vector<64x128xf32>
    %c0_5 = arith.constant 0 : index
    %c0_6 = arith.constant 0 : index
    %7 = vector.load %arg4[%c0_5, %c0_6] : memref<1x128xf32, #tpu.memory_space<vmem>>, vector<1x128xf32>
    %8 = vector.broadcast %7 : vector<1x128xf32> to vector<64x128xf32>
    %9 = arith.addf %6, %8 : vector<64x128xf32>
    %10 = arith.addf %9, %3 : vector<64x128xf32>
    %cst = arith.constant 0.000000e+00 : f32
    %11 = vector.broadcast %cst : f32 to vector<64x128xf32>
    %12 = arith.maximumf %10, %11 : vector<64x128xf32>
    %c0_7 = arith.constant 0 : index
    %c0_8 = arith.constant 0 : index
    %13 = vector.load %arg5[%c0_7, %c0_8] : memref<64x128xf32, #tpu.memory_space<vmem>>, vector<64x128xf32>
    tpu.vector_store %arg5[%c0_7, %c0_8], %12 {strides = array<i32>} : memref<64x128xf32, #tpu.memory_space<vmem>>, vector<64x128xf32>,
    return
  }
  func.func @transform_0(%arg0: i32) -> (i32, i32) {
    %c0_i32 = arith.constant 0 : i32
    %c0_i32_0 = arith.constant 0 : i32
    return %arg0, %c0_i32 : i32, i32
  }
  func.func @transform_1(%arg0: i32) -> (i32, i32) {
    %c0_i32 = arith.constant 0 : i32
    %c0_i32_0 = arith.constant 0 : i32
    return %arg0, %c0_i32 : i32, i32
  }
  func.func @transform_2(%arg0: i32) -> (i32, i32) {
    %c0_i32 = arith.constant 0 : i32
    %c0_i32_0 = arith.constant 0 : i32
    %c0_i32_1 = arith.constant 0 : i32
    return %c0_i32, %c0_i32_0 : i32, i32
  }
  func.func @transform_3(%arg0: i32) -> (i32, i32) {
    %c0_i32 = arith.constant 0 : i32
    %c0_i32_0 = arith.constant 0 : i32
    %c0_i32_1 = arith.constant 0 : i32
    return %c0_i32, %c0_i32_0 : i32, i32
  }
  func.func @transform_4(%arg0: i32) -> (i32, i32) {
    %c0_i32 = arith.constant 0 : i32
    %c0_i32_0 = arith.constant 0 : i32
    return %arg0, %c0_i32 : i32, i32
  }
}

module attributes {stable_mosaic.version = 11 : i64} {
  func.func @_matmul_kernel(%arg0: i32, %arg1: i32, %arg2: i32, %arg3: memref<64x128xbf16, #tpu.memory_space<vmem>>, %arg4: memref<128x128xbf16, #tpu.memory_space<vmem>>, %arg5: memref<64x128xbf16, #tpu.memory_space<vmem>>, %arg6: memref<64x128xf32, #tpu.memory_space<vmem>>) attributes {dimension_semantics = [#tpu.dimension_semantics<parallel>, #tpu.dimension_semantics<parallel>, #tpu.dimension_semantics<arbitrary>], iteration_bounds = array<i64: 2, 1, 1>, scalar_prefetch = 0 : i64, scratch_operands = 1 : i64, tpu.core_type = #tpu.core_type<tc>, window_params = [{transform_indices = @transform_0, window_bounds = array<i64: 64, 128>}, {transform_indices = @transform_1, window_bounds = array<i64: 128, 128>}, {transform_indices = @transform_2, window_bounds = array<i64: 64, 128>}]} {
    %c0_i32 = arith.constant 0 : i32
    %0 = arith.cmpi eq, %arg2, %c0_i32 : i32
    %1 = arith.extui %0 : i1 to i32
    %c0_i32_0 = arith.constant 0 : i32
    %2 = arith.cmpi ne, %1, %c0_i32_0 : i32
    scf.if %2 {
      %cst_10 = arith.constant 0.000000e+00 : f32
      %12 = vector.broadcast %cst_10 : f32 to vector<64x128xf32>
      %c0_11 = arith.constant 0 : index
      %c0_12 = arith.constant 0 : index
      %13 = vector.load %arg6[%c0_11, %c0_12] : memref<64x128xf32, #tpu.memory_space<vmem>>, vector<64x128xf32>
      tpu.vector_store %arg6[%c0_11, %c0_12], %12 {strides = array<i32>} : memref<64x128xf32, #tpu.memory_space<vmem>>, vector<64x128xf32>,
    } else {
    }
    %c0 = arith.constant 0 : index
    %c0_1 = arith.constant 0 : index
    %3 = vector.load %arg6[%c0, %c0_1] : memref<64x128xf32, #tpu.memory_space<vmem>>, vector<64x128xf32>
    %c0_2 = arith.constant 0 : index
    %c0_3 = arith.constant 0 : index
    %4 = vector.load %arg3[%c0_2, %c0_3] : memref<64x128xbf16, #tpu.memory_space<vmem>>, vector<64x128xbf16>
    %c0_4 = arith.constant 0 : index
    %c0_5 = arith.constant 0 : index
    %5 = vector.load %arg4[%c0_4, %c0_5] : memref<128x128xbf16, #tpu.memory_space<vmem>>, vector<128x128xbf16>
    %cst = arith.constant dense<0.000000e+00> : vector<64x128xf32>
    %6 = tpu.matmul %4, %5, %cst {dimension_numbers = #tpu.dot_dimension_numbers<[1], [0], [0], [1], [0, 0, 1, 1], [], []>} : vector<64x128xbf16>, vector<128x128xbf16>, vector<64x128xf32> -> vector<64x128xf32>
    %7 = arith.addf %3, %6 : vector<64x128xf32>
    %c0_6 = arith.constant 0 : index
    %c0_7 = arith.constant 0 : index
    %8 = vector.load %arg6[%c0_6, %c0_7] : memref<64x128xf32, #tpu.memory_space<vmem>>, vector<64x128xf32>
    tpu.vector_store %arg6[%c0_6, %c0_7], %7 {strides = array<i32>} : memref<64x128xf32, #tpu.memory_space<vmem>>, vector<64x128xf32>,
    %c0_i32_8 = arith.constant 0 : i32
    %9 = arith.cmpi eq, %arg2, %c0_i32_8 : i32
    %10 = arith.extui %9 : i1 to i32
    %c0_i32_9 = arith.constant 0 : i32
    %11 = arith.cmpi ne, %10, %c0_i32_9 : i32
    scf.if %11 {
      %c0_10 = arith.constant 0 : index
      %c0_11 = arith.constant 0 : index
      %12 = vector.load %arg6[%c0_10, %c0_11] : memref<64x128xf32, #tpu.memory_space<vmem>>, vector<64x128xf32>
      %13 = arith.truncf %12 : vector<64x128xf32> to vector<64x128xbf16>
      %c0_12 = arith.constant 0 : index
      %c0_13 = arith.constant 0 : index
      %14 = vector.load %arg5[%c0_12, %c0_13] : memref<64x128xbf16, #tpu.memory_space<vmem>>, vector<64x128xbf16>
      tpu.vector_store %arg5[%c0_12, %c0_13], %13 {strides = array<i32>} : memref<64x128xbf16, #tpu.memory_space<vmem>>, vector<64x128xbf16>,
    } else {
    }
    return
  }
  func.func @transform_0(%arg0: i32, %arg1: i32, %arg2: i32) -> (i32, i32) {
    %c0_i32 = arith.constant 0 : i32
    return %arg0, %arg2 : i32, i32
  }
  func.func @transform_1(%arg0: i32, %arg1: i32, %arg2: i32) -> (i32, i32) {
    %c0_i32 = arith.constant 0 : i32
    return %arg2, %arg1 : i32, i32
  }
  func.func @transform_2(%arg0: i32, %arg1: i32, %arg2: i32) -> (i32, i32) {
    %c0_i32 = arith.constant 0 : i32
    return %arg0, %arg1 : i32, i32
  }
}

</mosaic_0001>

<bundles_post_ra>
// kernel: residual_forward.6
= control target key start
LH: loop header
LB: loop body
LE: loop exit
PB: predicated region body
PF: predicated region fallthrough
CT: control target
= control target key end

     0   :  { %s431_s12 = smov 0   ;;  %s461_s0 = inlined_call_operand.vmem [shape: bf16[128,128], index: 0, kind: input, shape index: {}]   ;;  %s462_s1 = inlined_call_operand.vmem [shape: f32[1,128], index: 1, kind: input, shape index: {}]   ;;  %s463_s2 = inlined_call_operand.vmem [shape: f32[1,128], index: 2, kind: input, shape index: {}]   ;;  %s464_s3 = inlined_call_operand.vmem [shape: bf16[128,128], index: 3, kind: output, shape index: {}]  }
   0x1 LB: > { %s324_s13 = sadd.s32 4294967295, %s409_s12   ;;  %p328_p0 = scmp.ge.s32.totalorder %s409_s12, 1  ;;  %s409_s12 = sphi %s431_s12, %s13_s12  }
   0x2   : > { %p138_p1 = scmp.lt.s32.totalorder %s409_s12, 3 }
   0x4   : > { %p139_p2 = pnand %p328_p0, %p138_p1 }
   0x5   : > { %s329_s14 = sshll.u32 (!%p139_p2), %s324_s13, 3  ;;  %v333_v0 = vld [vmem:[%s462_s1] ss:$0 sm:$0xff] (!%p139_p2) }
   0x6   : > { %142 = sbr.rel (%p139_p2) target bundleno = 29 (0x1d), region = 32  ;;  %p163_p3 = scmp.lt.s32.totalorder (!%p139_p2), %s329_s14, 15  ;;  %v334_v9 = vld [vmem:[%s463_s2] ss:$0 sm:$0xff] (!%p139_p2) }
   0xd   : > { %s466_s14 = smov (!%p163_p3, %s329_s14), 15 }
   0xe   : > { %s330_s15 = sshll.u32 %s466_s14, 2 }
   0xf   : > { %s166_s18 = scalar_lea.vmem %s461_s0, %s330_s15  ;;  %s172_s25 = scalar_lea.vmem %s464_s3, %s330_s15 }
  0x10   : > { %v354_v1 = vld [vmem:[%s166_s18] sm:$0xff]   ;;  %v389_v2 = vld [vmem:[%s166_s18 + $0x8] sm:$0xff]   ;;  %v390_v3 = vld [vmem:[%s166_s18 + $0x10] sm:$0xff]  }
  0x11   : > { %v355_v4 = vunpack.c.l.bf16 %v354_v1  ;;  %v356_v5 = vunpack.c.h.bf16 %v354_v1  ;;  %v359_v6 = vunpack.c.l.bf16 %v389_v2  ;;  %v360_v7 = vunpack.c.h.bf16 %v389_v2  ;;  %v391_v8 = vld [vmem:[%s166_s18 + $0x18] sm:$0xff]  }
  0x12   : > { %v363_v10 = vunpack.c.l.bf16 %v390_v3  ;;  %v364_v11 = vunpack.c.h.bf16 %v390_v3  ;;  %v367_v12 = vunpack.c.l.bf16 %v391_v8  ;;  %v368_v13 = vunpack.c.h.bf16 %v391_v8 }
  0x13   : > { %v197_v14 = vmul.f32 %v355_v4, %v333_v0  ;;  %v198_v15 = vmul.f32 %v356_v5, %v333_v0  ;;  %v199_v16 = vmul.f32 %v359_v6, %v333_v0  ;;  %v200_v17 = vmul.f32 %v360_v7, %v333_v0 }
  0x14   : > { %v201_v18 = vmul.f32 %v363_v10, %v333_v0  ;;  %v202_v19 = vmul.f32 %v364_v11, %v333_v0  ;;  %v203_v20 = vmul.f32 %v367_v12, %v333_v0  ;;  %v204_v21 = vmul.f32 %v368_v13, %v333_v0 }
  0x15   : > { %v212_v22 = vadd.f32 %v334_v9, %v197_v14  ;;  %v213_v23 = vadd.f32 %v334_v9, %v198_v15  ;;  %v214_v24 = vadd.f32 %v334_v9, %v199_v16  ;;  %v215_v25 = vadd.f32 %v334_v9, %v200_v17 }
  0x16   : > { %v216_v26 = vadd.f32 %v334_v9, %v201_v18  ;;  %v217_v27 = vadd.f32 %v334_v9, %v202_v19  ;;  %v218_v28 = vadd.f32 %v334_v9, %v203_v20  ;;  %v219_v29 = vadd.f32 %v334_v9, %v204_v21 }
  0x17   : > { %v220_v30 = vmax.f32 %v212_v22, 0.0  ;;  %v221_v31 = vmax.f32 %v213_v23, 0.0  ;;  %v222_v32 = vmax.f32 %v214_v24, 0.0  ;;  %v223_v33 = vmax.f32 %v215_v25, 0.0 }
  0x18   : > { %v224_v34 = vmax.f32 %v216_v26, 0.0  ;;  %v225_v35 = vmax.f32 %v217_v27, 0.0  ;;  %v226_v36 = vmax.f32 %v218_v28, 0.0  ;;  %v227_v37 = vmax.f32 %v219_v29, 0.0 }
  0x19   : > { %v372_v38 = vpack.c.bf16 %v221_v31, %v220_v30  ;;  %v377_v39 = vpack.c.bf16 %v223_v33, %v222_v32 }
  0x1a   : > { %v382_v40 = vpack.c.bf16 %v225_v35, %v224_v34  ;;  %v387_v41 = vpack.c.bf16 %v227_v37, %v226_v36 }
  0x1b   : > { %373 = vst [vmem:[%s172_s25] sm:$0xff] %v372_v38   ;;  %392 = vst [vmem:[%s172_s25 + $0x8] sm:$0xff] %v377_v39  }
  0x1c   : > { %393 = vst [vmem:[%s172_s25 + $0x10] sm:$0xff] %v382_v40   ;;  %394 = vst [vmem:[%s172_s25 + $0x18] sm:$0xff] %v387_v41  }
  0x1d PF: > { %s13_s12 = sadd.s32 1, %s409_s12  }
  0x1e   : > { %p10_p4 = scmp.ge.s32.totalorder %s13_s12, 4  }
  0x20   :  { %12 = sbr.rel (!%p10_p4) target bundleno = 1 (0x1), region = 62 }

// kernel: residual_forward.5
= control target key start
LH: loop header
LB: loop body
LE: loop exit
PB: predicated region body
PF: predicated region fallthrough
CT: control target
= control target key end

     0   :  { %s886_s12 = smov 0   ;;  %s888_s13 = smov 0   ;;  %s964_s0 = inlined_call_operand.vmem [shape: bf16[128,128], index: 0, kind: input, shape index: {}]   ;;  %s965_s1 = inlined_call_operand.vmem [shape: bf16[128,128], index: 1, kind: input, shape index: {}]   ;;  %s966_s2 = inlined_call_operand.vmem [shape: bf16[128,128], index: 2, kind: output, shape index: {0}]   ;;  %s967_s3 = inlined_call_operand.vmem [shape: f32[2,2,128], index: 3, kind: output, shape index: {1}]  }
   0x1   :  { %s890_s14 = smov 0  }
   0x2 LB: > { %s33_s15 = sadd.s32 1, %s860_s13  ;;  %p695_p0 = scmp.ge.s32.totalorder %s864_s14, 1  ;;  %s864_s14 = sphi %s890_s14, %s14_s14   ;;  %s860_s13 = sphi %s888_s13, %s969_s13   ;;  %s856_s12 = sphi %s886_s12, %s968_s12  }
   0x3   : > { %p35_p1 = scmp.ge.s32.totalorder %s33_s15, 2  ;;  %p185_p2 = scmp.lt.s32.totalorder %s864_s14, 3 }
   0x5   : > { %s971_s15 = smov (%p35_p1, %s33_s15), 0  ;;  %p186_p3 = pnand %p695_p0, %p185_p2 }
   0x6   : > { %v830_v0 = vld [vmem:[%s965_s1] sm:$0xff] (!%p186_p3)   ;;  %s696_s18 = sshll.u32 (!%p186_p3), %s856_s12, 3  ;;  %v831_v1 = vld [vmem:[%s965_s1 + $0x8] sm:$0xff] (!%p186_p3)   ;;  %v832_v2 = vld [vmem:[%s965_s1 + $0x10] sm:$0xff] (!%p186_p3)   ;;  %p257_p5 = scmp.lt.s32.totalorder (!%p186_p3), %s856_s12, 1  ;;  %vm547_vm0 = vcmask (!%p186_p3), 1040384  }
   0x7   : > { %189 = sbr.rel (%p186_p3) target bundleno = 284 (0x11c), region = 28  ;;  %p231_p4 = scmp.lt.s32.totalorder (!%p186_p3), %s696_s18, 15  ;;  %766 = vmatprep.subr.bf16.mxu0 (!%p186_p3), %v830_v0  ;;  %790 = vmatprep.subr.bf16.mxu1 (!%p186_p3), %v830_v0  ;;  %v833_v3 = vld [vmem:[%s965_s1 + $0x18] sm:$0xff] (!%p186_p3)   ;;  %v834_v6 = vld [vmem:[%s965_s1 + $0x20] sm:$0xff] (!%p186_p3)   ;;  %v835_v7 = vld [vmem:[%s965_s1 + $0x28] sm:$0xff] (!%p186_p3)  }
   0x8   : > { %767 = vmatpush3.bf16.msra.mxu0 (!%p186_p3), %v830_v0  ;;  %798 = vmatpush3.bf16.msra.mxu1 (!%p186_p3), %v830_v0  ;;  %v836_v8 = vld [vmem:[%s965_s1 + $0x30] sm:$0xff] (!%p186_p3)   ;;  %v837_v9 = vld [vmem:[%s965_s1 + $0x38] sm:$0xff] (!%p186_p3)  }
   0x9   : > { %768 = vmatprep.subr.bf16.mxu0 (!%p186_p3), %v831_v1  ;;  %791 = vmatprep.subr.bf16.mxu1 (!%p186_p3), %v831_v1 }
   0xc   : > { %769 = vmatpush3.bf16.msra.mxu0 (!%p186_p3), %v831_v1  ;;  %799 = vmatpush3.bf16.msra.mxu1 (!%p186_p3), %v831_v1 }
   0xd   : > { %770 = vmatprep.subr.bf16.mxu0 (!%p186_p3), %v832_v2  ;;  %792 = vmatprep.subr.bf16.mxu1 (!%p186_p3), %v832_v2 }
   0xe   : > { %s973_s18 = smov (!%p231_p4, %s696_s18), 15  ;;  %s975_s12 = smov (!%p257_p5, %s856_s12), 1 }
   0xf   : > { %s697_s23 = sshll.u32 %s973_s18, 2  ;;  %s700_s17 = sshll.u32 %s975_s12, 1 }
  0x10   : > { %s924_s26 = scalar_lea.vmem %s964_s0, %s697_s23  ;;  %771 = vmatpush3.bf16.msra.mxu0 %v832_v2  ;;  %800 = vmatpush3.bf16.msra.mxu1 %v832_v2  ;;  %s255_s16 = scalar_lea.vmem %s966_s2, %s697_s23 }
  0x11   : > { %v838_v4 = vld [vmem:[%s924_s26] sm:$0xff]   ;;  %v840_v5 = vld [vmem:[%s924_s26 + $0x10] sm:$0xff]   ;;  %772 = vmatprep.subr.bf16.mxu0 %v833_v3  ;;  %793 = vmatprep.subr.bf16.mxu1 %v833_v3  ;;  %v839_v10 = vld [vmem:[%s924_s26 + $0x8] sm:$0xff]   ;;  %s263_s20 = scalar_lea.vmem %s967_s3, %s700_s17 }
  0x12   : > { %782 = vmatprep.mubr.bf16.mxu0 %v838_v4  ;;  %786 = vmatprep.mubr.bf16.mxu1 %v840_v5  ;;  %v841_v11 = vld [vmem:[%s924_s26 + $0x18] sm:$0xff]  }
  0x14   : > { %773 = vmatpush3.bf16.msra.mxu0 %v833_v3  ;;  %801 = vmatpush3.bf16.msra.mxu1 %v833_v3 }
  0x15   : > { %774 = vmatprep.subr.bf16.mxu0 %v834_v6  ;;  %794 = vmatprep.subr.bf16.mxu1 %v834_v6 }
  0x18   : > { %775 = vmatpush3.bf16.msra.mxu0 %v834_v6  ;;  %802 = vmatpush3.bf16.msra.mxu1 %v834_v6 }
  0x19   : > { %776 = vmatprep.subr.bf16.mxu0 %v835_v7  ;;  %795 = vmatprep.subr.bf16.mxu1 %v835_v7 }
  0x1c   : > { %777 = vmatpush3.bf16.msra.mxu0 %v835_v7  ;;  %803 = vmatpush3.bf16.msra.mxu1 %v835_v7 }
  0x1d   : > { %778 = vmatprep.subr.bf16.mxu0 %v836_v8  ;;  %796 = vmatprep.subr.bf16.mxu1 %v836_v8 }
  0x20   : > { %779 = vmatpush3.bf16.msra.mxu0 %v836_v8  ;;  %804 = vmatpush3.bf16.msra.mxu1 %v836_v8 }
  0x21   : > { %780 = vmatprep.subr.bf16.mxu0 %v837_v9  ;;  %797 = vmatprep.subr.bf16.mxu1 %v837_v9 }
  0x24   : > { %781 = vmatpush3.bf16.msra.mxu0 %v837_v9  ;;  %805 = vmatpush3.bf16.msra.mxu1 %v837_v9 }
  0x27   : > { %783 = vmatmul.mubr.bf16.vlgmr.msra.gmra.mrb[0].mxu0 %v839_v10  ;;  %787 = vmatmul.mubr.bf16.vlgmr.msra.gmra.mrb[0].mxu1 %v841_v11 }
  0xfa   : > { %v784_v12 = vpop.f32.mrb[0].mxu0  ;;  %v788_v13 = vpop.f32.mrb[0].mxu1 }
  0xfb   : > { %v415_v14 = vpop.f32.mrb[1].mxu0  ;;  %v431_v15 = vpop.f32.mrb[1].mxu1  ;;  %v528_v27 = vmul.f32 %v784_v12, %v784_v12  ;;  %v532_v39 = vmul.f32 %v788_v13, %v788_v13 }
  0xfc   : > { %v785_v16 = vpop.f32.mrb[2].mxu0  ;;  %v789_v17 = vpop.f32.mrb[2].mxu1  ;;  %v526_v18 = vmul.f32 %v415_v14, %v415_v14  ;;  %v530_v33 = vmul.f32 %v431_v15, %v431_v15 }
  0xfd   : > { %v739_v19 = vpack.c.bf16 %v785_v16, %v784_v12  ;;  %v418_v20 = vpop.f32.mrb[3].mxu0  ;;  %v749_v21 = vpack.c.bf16 %v789_v17, %v788_v13  ;;  %v434_v22 = vpop.f32.mrb[3].mxu1  ;;  %v529_v30 = vmul.f32 %v785_v16, %v785_v16  ;;  %v533_v42 = vmul.f32 %v789_v17, %v789_v17 }
  0xfe   : > { %v734_v23 = vpack.c.bf16 %v418_v20, %v415_v14  ;;  %v513_v24 = vadd.f32 %v418_v20, %v415_v14  ;;  %v527_v25 = vmul.f32 %v418_v20, %v418_v20  ;;  %v744_v26 = vpack.c.bf16 %v434_v22, %v431_v15 }
  0xff   : > { %751 = vst [vmem:[%s255_s16 + $0x8] sm:$0xff] %v739_v19   ;;  %753 = vst [vmem:[%s255_s16 + $0x18] sm:$0xff] %v749_v21   ;;  %v531_v38 = vmul.f32 %v434_v22, %v434_v22 }
 0x100   : > { %735 = vst [vmem:[%s255_s16] sm:$0xff] %v734_v23   ;;  %v514_v28 = vadd.f32 %v784_v12, %v513_v24  ;;  %v534_v29 = vadd.f32 %v527_v25, %v526_v18  ;;  %752 = vst [vmem:[%s255_s16 + $0x10] sm:$0xff] %v744_v26  }
 0x102   : > { %v535_v31 = vadd.f32 %v534_v29, %v528_v27  ;;  %v515_v32 = vadd.f32 %v785_v16, %v514_v28 }
 0x104   : > { %v516_v34 = vadd.f32 %v515_v32, %v431_v15  ;;  %v536_v35 = vadd.f32 %v535_v31, %v529_v30 }
 0x106   : > { %v537_v36 = vadd.f32 %v536_v35, %v530_v33  ;;  %v517_v37 = vadd.f32 %v516_v34, %v434_v22 }
 0x108   : > { %v518_v40 = vadd.f32 %v788_v13, %v517_v37  ;;  %v538_v41 = vadd.f32 %v537_v36, %v531_v38 }
 0x10a   : > { %v519_v43 = vadd.f32 %v789_v17, %v518_v40  ;;  %v539_v44 = vadd.f32 %v538_v41, %v532_v39 }
 0x10c   : > { %v520_v45 = vrot.slane %v519_v43, 4  ;;  %v540_v46 = vadd.f32 %v539_v44, %v533_v42 }
 0x10e   : > { %v521_v47 = vadd.f32 %v520_v45, %v519_v43  ;;  %v541_v48 = vrot.slane %v540_v46, 4 }
 0x110   : > { %v522_v49 = vrot.slane %v521_v47, 2  ;;  %v542_v50 = vadd.f32 %v541_v48, %v540_v46 }
 0x112   : > { %v523_v51 = vadd.f32 %v522_v49, %v521_v47  ;;  %v543_v52 = vrot.slane %v542_v50, 2 }
 0x114   : > { %v524_v53 = vrot.slane %v523_v51, 1  ;;  %v544_v54 = vadd.f32 %v543_v52, %v542_v50 }
 0x116   : > { %v545_v55 = vrot.slane %v544_v54, 1  ;;  %v525_v56 = vadd.f32 %v524_v53, %v523_v51 }
 0x118   : > { %v546_v57 = vadd.f32 %v545_v55, %v544_v54 }
 0x11a   : > { %v548_v58 = vsel %vm547_vm0, %v525_v56, %v546_v57 }
 0x11b   : > { %549 = vst [vmem:[%s263_s20] sm:$0x3] %v548_v58 }
 0x11c PF: > { %s14_s14 = sadd.s32 1, %s864_s14   ;;  %s968_s12 = smov %s860_s13 }
 0x11d   : > { %p11_p6 = scmp.ge.s32.totalorder %s14_s14, 4   ;;  %s969_s13 = smov %s971_s15 }
 0x11f   :  { %13 = sbr.rel (!%p11_p6) target bundleno = 2 (0x2), region = 81 }

// kernel: residual_forward.9
= control target key start
LH: loop header
LB: loop body
LE: loop exit
PB: predicated region body
PF: predicated region fallthrough
CT: control target
= control target key end

     0   :  { %s471_s15 = smov 0   ;;  %s501_s0 = inlined_call_operand.vmem [shape: bf16[128,128], index: 0, kind: input, shape index: {}]   ;;  %s502_s1 = inlined_call_operand.vmem [shape: bf16[128,128], index: 1, kind: input, shape index: {}]   ;;  %s503_s2 = inlined_call_operand.vmem [shape: f32[1,128], index: 2, kind: input, shape index: {}]   ;;  %s504_s3 = inlined_call_operand.vmem [shape: f32[1,128], index: 3, kind: input, shape index: {}]   ;;  %s505_s4 = inlined_call_operand.vmem [shape: f32[128,128], index: 4, kind: output, shape index: {}]  }
   0x1 LB: > { %s377_s16 = sadd.s32 4294967295, %s444_s15   ;;  %p381_p0 = scmp.ge.s32.totalorder %s444_s15, 1  ;;  %s444_s15 = sphi %s471_s15, %s14_s15  }
   0x2   : > { %p174_p1 = scmp.lt.s32.totalorder %s444_s15, 3 }
   0x4   : > { %p175_p2 = pnand %p381_p0, %p174_p1 }
   0x5   : > { %s382_s17 = sshll.u32 (!%p175_p2), %s377_s16, 3  ;;  %v388_v0 = vld [vmem:[%s503_s2] ss:$0 sm:$0xff] (!%p175_p2) }
   0x6   : > { %178 = sbr.rel (%p175_p2) target bundleno = 36 (0x24), region = 36  ;;  %p206_p3 = scmp.lt.s32.totalorder (!%p175_p2), %s382_s17, 15  ;;  %v389_v11 = vld [vmem:[%s504_s3] ss:$0 sm:$0xff] (!%p175_p2) }
   0xd   : > { %s507_s17 = smov (!%p206_p3, %s382_s17), 15 }
   0xe   : > { %s383_s18 = sshll.u32 %s507_s17, 2  ;;  %s387_s29 = sshll.u32 %s507_s17, 3 }
   0xf   : > { %s209_s21 = scalar_lea.vmem %s501_s0, %s383_s18  ;;  %s215_s24 = scalar_lea.vmem %s502_s1, %s383_s18 }
  0x10   : > { %v393_v1 = vld [vmem:[%s209_s21] sm:$0xff]   ;;  %v424_v3 = vld [vmem:[%s209_s21 + $0x8] sm:$0xff]   ;;  %v425_v9 = vld [vmem:[%s209_s21 + $0x10] sm:$0xff]   ;;  %s221_s6 = scalar_lea.vmem %s505_s4, %s387_s29 }
  0x11   : > { %v409_v2 = vld [vmem:[%s215_s24] sm:$0xff]   ;;  %v394_v4 = vunpack.c.l.bf16 %v393_v1  ;;  %v395_v6 = vunpack.c.h.bf16 %v393_v1  ;;  %v427_v8 = vld [vmem:[%s215_s24 + $0x8] sm:$0xff]   ;;  %v428_v10 = vld [vmem:[%s215_s24 + $0x10] sm:$0xff]   ;;  %v398_v12 = vunpack.c.l.bf16 %v424_v3  ;;  %v399_v14 = vunpack.c.h.bf16 %v424_v3 }
  0x12   : > { %v410_v5 = vunpack.c.l.bf16 %v409_v2  ;;  %v411_v7 = vunpack.c.h.bf16 %v409_v2  ;;  %v414_v13 = vunpack.c.l.bf16 %v427_v8  ;;  %v415_v15 = vunpack.c.h.bf16 %v427_v8  ;;  %v426_v16 = vld [vmem:[%s209_s21 + $0x18] sm:$0xff]  }
  0x13   : > { %v262_v17 = vmul.f32 %v394_v4, %v388_v0  ;;  %v263_v18 = vmul.f32 %v395_v6, %v388_v0  ;;  %v402_v19 = vunpack.c.l.bf16 %v425_v9  ;;  %v418_v20 = vunpack.c.l.bf16 %v428_v10  ;;  %v429_v21 = vld [vmem:[%s215_s24 + $0x18] sm:$0xff]  }
  0x14   : > { %v264_v22 = vmul.f32 %v398_v12, %v388_v0  ;;  %v265_v23 = vmul.f32 %v399_v14, %v388_v0  ;;  %v403_v24 = vunpack.c.h.bf16 %v425_v9  ;;  %v419_v25 = vunpack.c.h.bf16 %v428_v10 }
  0x15   : > { %v277_v26 = vadd.f32 %v389_v11, %v262_v17  ;;  %v278_v27 = vadd.f32 %v389_v11, %v263_v18  ;;  %v266_v28 = vmul.f32 %v402_v19, %v388_v0  ;;  %v406_v29 = vunpack.c.l.bf16 %v426_v16 }
  0x16   : > { %v279_v30 = vadd.f32 %v389_v11, %v264_v22  ;;  %v280_v31 = vadd.f32 %v389_v11, %v265_v23  ;;  %v267_v32 = vmul.f32 %v403_v24, %v388_v0  ;;  %v422_v33 = vunpack.c.l.bf16 %v429_v21 }
  0x17   : > { %v285_v34 = vadd.f32 %v410_v5, %v277_v26  ;;  %v286_v35 = vadd.f32 %v411_v7, %v278_v27  ;;  %v281_v36 = vadd.f32 %v389_v11, %v266_v28  ;;  %v268_v37 = vmul.f32 %v406_v29, %v388_v0 }
  0x18   : > { %v287_v38 = vadd.f32 %v414_v13, %v279_v30  ;;  %v288_v39 = vadd.f32 %v415_v15, %v280_v31  ;;  %v282_v40 = vadd.f32 %v389_v11, %v267_v32  ;;  %v407_v41 = vunpack.c.h.bf16 %v426_v16 }
  0x19   : > { %v293_v42 = vmax.f32 %v285_v34, 0.0  ;;  %v294_v43 = vmax.f32 %v286_v35, 0.0  ;;  %v289_v44 = vadd.f32 %v418_v20, %v281_v36  ;;  %v283_v45 = vadd.f32 %v389_v11, %v268_v37 }
  0x1a   : > { %v295_v46 = vmax.f32 %v287_v38, 0.0  ;;  %v296_v47 = vmax.f32 %v288_v39, 0.0  ;;  %v290_v48 = vadd.f32 %v419_v25, %v282_v40  ;;  %v423_v51 = vunpack.c.h.bf16 %v429_v21 }
  0x1b   : > { %301 = vst [vmem:[%s221_s6] sm:$0xff] %v293_v42  ;;  %302 = vst [vmem:[%s221_s6 + $0x8] sm:$0xff] %v294_v43  ;;  %v297_v49 = vmax.f32 %v289_v44, 0.0  ;;  %v291_v50 = vadd.f32 %v422_v33, %v283_v45  ;;  %v269_v52 = vmul.f32 %v407_v41, %v388_v0 }
  0x1c   : > { %303 = vst [vmem:[%s221_s6 + $0x10] sm:$0xff] %v295_v46  ;;  %304 = vst [vmem:[%s221_s6 + $0x18] sm:$0xff] %v296_v47  ;;  %v298_v53 = vmax.f32 %v290_v48, 0.0 }
  0x1d   : > { %305 = vst [vmem:[%s221_s6 + $0x20] sm:$0xff] %v297_v49  ;;  %v299_v54 = vmax.f32 %v291_v50, 0.0  ;;  %v284_v55 = vadd.f32 %v389_v11, %v269_v52 }
  0x1e   : > { %306 = vst [vmem:[%s221_s6 + $0x28] sm:$0xff] %v298_v53 }
  0x1f   : > { %307 = vst [vmem:[%s221_s6 + $0x30] sm:$0xff] %v299_v54  ;;  %v292_v56 = vadd.f32 %v423_v51, %v284_v55 }
  0x21   : > { %v300_v57 = vmax.f32 %v292_v56, 0.0 }
  0x23   : > { %308 = vst [vmem:[%s221_s6 + $0x38] sm:$0xff] %v300_v57 }
  0x24 PF: > { %s14_s15 = sadd.s32 1, %s444_s15  }
  0x25   : > { %p11_p4 = scmp.ge.s32.totalorder %s14_s15, 4  }
  0x27   :  { %13 = sbr.rel (!%p11_p4) target bundleno = 1 (0x1), region = 69 }

// kernel: residual_forward.8
= control target key start
LH: loop header
LB: loop body
LE: loop exit
PB: predicated region body
PF: predicated region fallthrough
CT: control target
= control target key end

     0   :  { %s756_s9 = smov 0   ;;  %s758_s10 = smov 0   ;;  %s826_s0 = inlined_call_operand.vmem [shape: bf16[128,128], index: 0, kind: input, shape index: {}]   ;;  %s827_s1 = inlined_call_operand.vmem [shape: bf16[128,128], index: 1, kind: input, shape index: {}]   ;;  %s828_s2 = inlined_call_operand.vmem [shape: bf16[128,128], index: 2, kind: output, shape index: {}]  }
   0x1   :  { %s760_s11 = smov 0  }
   0x2 LB: > { %s31_s12 = sadd.s32 1, %s735_s10  ;;  %p571_p0 = scmp.ge.s32.totalorder %s739_s11, 1  ;;  %s739_s11 = sphi %s760_s11, %s12_s11   ;;  %s735_s10 = sphi %s758_s10, %s830_s10   ;;  %s731_s9 = sphi %s756_s9, %s829_s9  }
   0x3   : > { %p33_p1 = scmp.ge.s32.totalorder %s31_s12, 2  ;;  %p155_p2 = scmp.lt.s32.totalorder %s739_s11, 3 }
   0x5   : > { %s832_s12 = smov (%p33_p1, %s31_s12), 0  ;;  %p156_p3 = pnand %p571_p0, %p155_p2 }
   0x6   : > { %v705_v0 = vld [vmem:[%s827_s1] sm:$0xff] (!%p156_p3)   ;;  %s572_s15 = sshll.u32 (!%p156_p3), %s731_s9, 3  ;;  %v706_v1 = vld [vmem:[%s827_s1 + $0x8] sm:$0xff] (!%p156_p3)   ;;  %v707_v2 = vld [vmem:[%s827_s1 + $0x10] sm:$0xff] (!%p156_p3)  }
   0x7   : > { %159 = sbr.rel (%p156_p3) target bundleno = 257 (0x101), region = 28  ;;  %p192_p4 = scmp.lt.s32.totalorder (!%p156_p3), %s572_s15, 15  ;;  %641 = vmatprep.subr.bf16.mxu0 (!%p156_p3), %v705_v0  ;;  %665 = vmatprep.subr.bf16.mxu1 (!%p156_p3), %v705_v0  ;;  %v708_v3 = vld [vmem:[%s827_s1 + $0x18] sm:$0xff] (!%p156_p3)   ;;  %v709_v6 = vld [vmem:[%s827_s1 + $0x20] sm:$0xff] (!%p156_p3)   ;;  %v710_v7 = vld [vmem:[%s827_s1 + $0x28] sm:$0xff] (!%p156_p3)  }
   0x8   : > { %642 = vmatpush3.bf16.msra.mxu0 (!%p156_p3), %v705_v0  ;;  %673 = vmatpush3.bf16.msra.mxu1 (!%p156_p3), %v705_v0  ;;  %v711_v8 = vld [vmem:[%s827_s1 + $0x30] sm:$0xff] (!%p156_p3)   ;;  %v712_v9 = vld [vmem:[%s827_s1 + $0x38] sm:$0xff] (!%p156_p3)  }
   0x9   : > { %643 = vmatprep.subr.bf16.mxu0 (!%p156_p3), %v706_v1  ;;  %666 = vmatprep.subr.bf16.mxu1 (!%p156_p3), %v706_v1 }
   0xc   : > { %644 = vmatpush3.bf16.msra.mxu0 (!%p156_p3), %v706_v1  ;;  %674 = vmatpush3.bf16.msra.mxu1 (!%p156_p3), %v706_v1 }
   0xd   : > { %645 = vmatprep.subr.bf16.mxu0 (!%p156_p3), %v707_v2  ;;  %667 = vmatprep.subr.bf16.mxu1 (!%p156_p3), %v707_v2 }
   0xe   : > { %s834_s15 = smov (!%p192_p4, %s572_s15), 15 }
   0xf   : > { %s573_s20 = sshll.u32 %s834_s15, 2 }
  0x10   : > { %s791_s23 = scalar_lea.vmem %s826_s0, %s573_s20  ;;  %646 = vmatpush3.bf16.msra.mxu0 %v707_v2  ;;  %675 = vmatpush3.bf16.msra.mxu1 %v707_v2  ;;  %s216_s8 = scalar_lea.vmem %s828_s2, %s573_s20 }
  0x11   : > { %v713_v4 = vld [vmem:[%s791_s23] sm:$0xff]   ;;  %v714_v5 = vld [vmem:[%s791_s23 + $0x10] sm:$0xff]   ;;  %647 = vmatprep.subr.bf16.mxu0 %v708_v3  ;;  %668 = vmatprep.subr.bf16.mxu1 %v708_v3  ;;  %v715_v10 = vld [vmem:[%s791_s23 + $0x8] sm:$0xff]  }
  0x12   : > { %657 = vmatprep.mubr.bf16.mxu0 %v713_v4  ;;  %661 = vmatprep.mubr.bf16.mxu1 %v714_v5  ;;  %v716_v11 = vld [vmem:[%s791_s23 + $0x18] sm:$0xff]  }
  0x14   : > { %648 = vmatpush3.bf16.msra.mxu0 %v708_v3  ;;  %676 = vmatpush3.bf16.msra.mxu1 %v708_v3 }
  0x15   : > { %649 = vmatprep.subr.bf16.mxu0 %v709_v6  ;;  %669 = vmatprep.subr.bf16.mxu1 %v709_v6 }
  0x18   : > { %650 = vmatpush3.bf16.msra.mxu0 %v709_v6  ;;  %677 = vmatpush3.bf16.msra.mxu1 %v709_v6 }
  0x19   : > { %651 = vmatprep.subr.bf16.mxu0 %v710_v7  ;;  %670 = vmatprep.subr.bf16.mxu1 %v710_v7 }
  0x1c   : > { %652 = vmatpush3.bf16.msra.mxu0 %v710_v7  ;;  %678 = vmatpush3.bf16.msra.mxu1 %v710_v7 }
  0x1d   : > { %653 = vmatprep.subr.bf16.mxu0 %v711_v8  ;;  %671 = vmatprep.subr.bf16.mxu1 %v711_v8 }
  0x20   : > { %654 = vmatpush3.bf16.msra.mxu0 %v711_v8  ;;  %679 = vmatpush3.bf16.msra.mxu1 %v711_v8 }
  0x21   : > { %655 = vmatprep.subr.bf16.mxu0 %v712_v9  ;;  %672 = vmatprep.subr.bf16.mxu1 %v712_v9 }
  0x24   : > { %656 = vmatpush3.bf16.msra.mxu0 %v712_v9  ;;  %680 = vmatpush3.bf16.msra.mxu1 %v712_v9 }
  0x27   : > { %658 = vmatmul.mubr.bf16.vlgmr.msra.gmra.mrb[0].mxu0 %v715_v10  ;;  %662 = vmatmul.mubr.bf16.vlgmr.msra.gmra.mrb[0].mxu1 %v716_v11 }
  0xfa   : > { %v659_v12 = vpop.f32.mrb[0].mxu0  ;;  %v663_v13 = vpop.f32.mrb[0].mxu1 }
  0xfb   : > { %v369_v14 = vpop.f32.mrb[1].mxu0  ;;  %v385_v15 = vpop.f32.mrb[1].mxu1 }
  0xfc   : > { %v660_v16 = vpop.f32.mrb[2].mxu0  ;;  %v664_v17 = vpop.f32.mrb[2].mxu1 }
  0xfd   : > { %v614_v18 = vpack.c.bf16 %v660_v16, %v659_v12  ;;  %v624_v19 = vpack.c.bf16 %v664_v17, %v663_v13  ;;  %v372_v20 = vpop.f32.mrb[3].mxu0  ;;  %v388_v21 = vpop.f32.mrb[3].mxu1 }
  0xfe   : > { %v609_v22 = vpack.c.bf16 %v372_v20, %v369_v14  ;;  %v619_v23 = vpack.c.bf16 %v388_v21, %v385_v15 }
  0xff   : > { %626 = vst [vmem:[%s216_s8 + $0x8] sm:$0xff] %v614_v18   ;;  %628 = vst [vmem:[%s216_s8 + $0x18] sm:$0xff] %v624_v19  }
 0x100   : > { %610 = vst [vmem:[%s216_s8] sm:$0xff] %v609_v22   ;;  %627 = vst [vmem:[%s216_s8 + $0x10] sm:$0xff] %v619_v23  }
 0x101 PF: > { %s12_s11 = sadd.s32 1, %s739_s11   ;;  %s829_s9 = smov %s735_s10 }
 0x102   : > { %p9_p5 = scmp.ge.s32.totalorder %s12_s11, 4   ;;  %s830_s10 = smov %s832_s12 }
 0x104   :  { %11 = sbr.rel (!%p9_p5) target bundleno = 2 (0x2), region = 69 }

// kernel: residual_forward.7
= control target key start
LH: loop header
LB: loop body
LE: loop exit
PB: predicated region body
PF: predicated region fallthrough
CT: control target
= control target key end

     0   :  { %s2230_s12 = smov 0   ;;  %s2232_s13 = smov 0   ;;  %s2532_s0 = inlined_call_operand.vmem [shape: bf16[128,1152], index: 0, kind: input, shape index: {}]   ;;  %s2533_s1 = inlined_call_operand.vmem [shape: bf16[1152,128], index: 1, kind: input, shape index: {}]   ;;  %s2534_s2 = inlined_call_operand.vmem [shape: bf16[128,128], index: 2, kind: output, shape index: {0}]   ;;  %s2535_s3 = inlined_call_operand.vmem [shape: f32[2,2,128], index: 3, kind: output, shape index: {1}]  }
   0x1   :  { %s2234_s14 = smov 0  }
   0x2 LB: > { %s33_s15 = sadd.s32 1, %s2204_s13  ;;  %p1670_p0 = scmp.ge.s32.totalorder %s2208_s14, 1  ;;  %s2208_s14 = sphi %s2234_s14, %s14_s14   ;;  %s2204_s13 = sphi %s2232_s13, %s2537_s13   ;;  %s2200_s12 = sphi %s2230_s12, %s2536_s12  }
   0x3   : > { %p35_p1 = scmp.ge.s32.totalorder %s33_s15, 2  ;;  %p188_p2 = scmp.lt.s32.totalorder %s2208_s14, 3 }
   0x5   : > { %s2539_s15 = smov (%p35_p1, %s33_s15), 0  ;;  %p189_p3 = pnand %p1670_p0, %p188_p2 }
   0x6   : > { %v2062_v0 = vld [vmem:[%s2533_s1 + $0x40] sm:$0xff] (!%p189_p3)   ;;  %v2066_v4 = vld [vmem:[%s2533_s1 + $0x48] sm:$0xff] (!%p189_p3)   ;;  %v2070_v8 = vld [vmem:[%s2533_s1 + $0x50] sm:$0xff] (!%p189_p3)   ;;  %s1671_s23 = sshll.u32 (!%p189_p3), %s2200_s12, 3  ;;  %p265_p5 = scmp.lt.s32.totalorder (!%p189_p3), %s2200_s12, 1  ;;  %vm1519_vm0 = vcmask (!%p189_p3), 1040384  }
   0x7   : > { %192 = sbr.rel (%p189_p3) target bundleno = 352 (0x160), region = 28  ;;  %v2063_v1 = vld [vmem:[%s2533_s1 + $0xc0] sm:$0xff] (!%p189_p3)   ;;  %1825 = vmatprep.subr.bf16.mxu0 (!%p189_p3), %v2062_v0  ;;  %v2067_v5 = vld [vmem:[%s2533_s1 + $0xc8] sm:$0xff] (!%p189_p3)   ;;  %v2071_v9 = vld [vmem:[%s2533_s1 + $0xd0] sm:$0xff] (!%p189_p3)   ;;  %p237_p4 = scmp.lt.s32.totalorder (!%p189_p3), %s1671_s23, 15 }
   0x8   : > { %v2064_v2 = vld [vmem:[%s2533_s1] sm:$0xff] (!%p189_p3)   ;;  %1865 = vmatprep.subr.bf16.mxu1 (!%p189_p3), %v2063_v1  ;;  %v2068_v6 = vld [vmem:[%s2533_s1 + $0x8] sm:$0xff] (!%p189_p3)   ;;  %v2072_v10 = vld [vmem:[%s2533_s1 + $0x10] sm:$0xff] (!%p189_p3)  }
   0x9   : > { %v2065_v3 = vld [vmem:[%s2533_s1 + $0x80] sm:$0xff] (!%p189_p3)   ;;  %1826 = vmatpush3.bf16.msra.mxu0 (!%p189_p3), %v2064_v2  ;;  %v2069_v7 = vld [vmem:[%s2533_s1 + $0x88] sm:$0xff] (!%p189_p3)   ;;  %v2073_v11 = vld [vmem:[%s2533_s1 + $0x90] sm:$0xff] (!%p189_p3)  }
   0xa   : > { %1866 = vmatpush3.bf16.msra.mxu1 (!%p189_p3), %v2065_v3  ;;  %1827 = vmatprep.subr.bf16.mxu0 (!%p189_p3), %v2066_v4  ;;  %v2074_v12 = vld [vmem:[%s2533_s1 + $0x58] sm:$0xff] (!%p189_p3)   ;;  %v2078_v16 = vld [vmem:[%s2533_s1 + $0x60] sm:$0xff] (!%p189_p3)   ;;  %v2082_v20 = vld [vmem:[%s2533_s1 + $0x68] sm:$0xff] (!%p189_p3)  }
   0xb   : > { %1867 = vmatprep.subr.bf16.mxu1 (!%p189_p3), %v2067_v5  ;;  %v2075_v13 = vld [vmem:[%s2533_s1 + $0xd8] sm:$0xff] (!%p189_p3)   ;;  %v2079_v17 = vld [vmem:[%s2533_s1 + $0xe0] sm:$0xff] (!%p189_p3)   ;;  %v2083_v21 = vld [vmem:[%s2533_s1 + $0xe8] sm:$0xff] (!%p189_p3)  }
   0xc   : > { %v2076_v14 = vld [vmem:[%s2533_s1 + $0x18] sm:$0xff] (!%p189_p3)   ;;  %v2080_v18 = vld [vmem:[%s2533_s1 + $0x20] sm:$0xff] (!%p189_p3)   ;;  %v2084_v22 = vld [vmem:[%s2533_s1 + $0x28] sm:$0xff] (!%p189_p3)  }
   0xd   : > { %1828 = vmatpush3.bf16.msra.mxu0 (!%p189_p3), %v2068_v6  ;;  %v2077_v15 = vld [vmem:[%s2533_s1 + $0x98] sm:$0xff] (!%p189_p3)   ;;  %v2081_v19 = vld [vmem:[%s2533_s1 + $0xa0] sm:$0xff] (!%p189_p3)   ;;  %v2085_v23 = vld [vmem:[%s2533_s1 + $0xa8] sm:$0xff] (!%p189_p3)  }
   0xe   : > { %1868 = vmatpush3.bf16.msra.mxu1 %v2069_v7  ;;  %1829 = vmatprep.subr.bf16.mxu0 %v2070_v8  ;;  %s2541_s23 = smov (!%p237_p4, %s1671_s23), 15  ;;  %v2086_v24 = vld [vmem:[%s2533_s1 + $0x70] sm:$0xff]   ;;  %v2090_v28 = vld [vmem:[%s2533_s1 + $0x78] sm:$0xff]   ;;  %v2100_v36 = vld [vmem:[%s2533_s1 + $0x140] sm:$0xff]   ;;  %s2543_s12 = smov (!%p265_p5, %s2200_s12), 1 }
   0xf   : > { %1869 = vmatprep.subr.bf16.mxu1 %v2071_v9  ;;  %v2087_v25 = vld [vmem:[%s2533_s1 + $0xf0] sm:$0xff]   ;;  %s2037_s24 = smul.u32 36, %s2541_s23  ;;  %v2091_v29 = vld [vmem:[%s2533_s1 + $0xf8] sm:$0xff]   ;;  %v2101_v37 = vld [vmem:[%s2533_s1 + $0x1c0] sm:$0xff]  }
  0x10   : > { %v2088_v26 = vld [vmem:[%s2533_s1 + $0x30] sm:$0xff]   ;;  %v2092_v30 = vld [vmem:[%s2533_s1 + $0x38] sm:$0xff]   ;;  %v2102_v38 = vld [vmem:[%s2533_s1 + $0x100] sm:$0xff]  }
  0x11   : > { %1830 = vmatpush3.bf16.msra.mxu0 %v2072_v10  ;;  %v2089_v27 = vld [vmem:[%s2533_s1 + $0xb0] sm:$0xff]   ;;  %s2347_s8 = scalar_lea.vmem %s2532_s0, %s2037_s24  ;;  %v2093_v31 = vld [vmem:[%s2533_s1 + $0xb8] sm:$0xff]   ;;  %v2103_v39 = vld [vmem:[%s2533_s1 + $0x180] sm:$0xff]  }
  0x12   : > { %1870 = vmatpush3.bf16.msra.mxu1 %v2073_v11  ;;  %1831 = vmatprep.subr.bf16.mxu0 %v2074_v12  ;;  %v2094_v32 = vld [vmem:[%s2347_s8] ss:$36 sps:$4 sm:$0xff]   ;;  %v2097_v34 = vld [vmem:[%s2347_s8 + $0x8] ss:$36 sps:$4 sm:$0xff]   ;;  %v2110_v45 = vld [vmem:[%s2347_s8 + $0x54] ss:$36 sps:$4 sm:$0xff]  }
  0x13   : > { %1871 = vmatprep.subr.bf16.mxu1 %v2075_v13  ;;  %v2096_v33 = vld [vmem:[%s2347_s8 + $0x4] ss:$36 sps:$4 sm:$0xff]   ;;  %v2099_v35 = vld [vmem:[%s2347_s8 + $0xc] ss:$36 sps:$4 sm:$0xff]   ;;  %v2118_v52 = vld [vmem:[%s2533_s1 + $0x158] sm:$0xff]  }
  0x14   : > { %1125 = vmatprep.mubr.bf16.mxu0 %v2096_v33  ;;  %1190 = vmatprep.mubr.bf16.mxu1 %v2099_v35  ;;  %v2104_v40 = vld [vmem:[%s2533_s1 + $0x148] sm:$0xff]   ;;  %v2113_v47 = vld [vmem:[%s2347_s8 + $0x50] ss:$36 sps:$4 sm:$0xff]   ;;  %v2119_v53 = vld [vmem:[%s2533_s1 + $0x1d8] sm:$0xff]  }
  0x15   : > { %1832 = vmatpush3.bf16.msra.mxu0 %v2076_v14  ;;  %v2105_v41 = vld [vmem:[%s2533_s1 + $0x1c8] sm:$0xff]   ;;  %v2114_v48 = vld [vmem:[%s2533_s1 + $0x150] sm:$0xff]   ;;  %v2120_v54 = vld [vmem:[%s2533_s1 + $0x118] sm:$0xff]  }
  0x16   : > { %1872 = vmatpush3.bf16.msra.mxu1 %v2077_v15  ;;  %1833 = vmatprep.subr.bf16.mxu0 %v2078_v16  ;;  %v2106_v42 = vld [vmem:[%s2533_s1 + $0x108] sm:$0xff]   ;;  %v2115_v49 = vld [vmem:[%s2533_s1 + $0x1d0] sm:$0xff]   ;;  %v2121_v55 = vld [vmem:[%s2533_s1 + $0x198] sm:$0xff]  }
  0x17   : > { %1873 = vmatprep.subr.bf16.mxu1 %v2079_v17  ;;  %v2107_v43 = vld [vmem:[%s2533_s1 + $0x188] sm:$0xff]   ;;  %v2116_v50 = vld [vmem:[%s2533_s1 + $0x110] sm:$0xff]   ;;  %v2124_v57 = vld [vmem:[%s2347_s8 + $0x9c] ss:$36 sps:$4 sm:$0xff]  }
  0x18   : > { %v2108_v44 = vld [vmem:[%s2347_s8 + $0x4c] ss:$36 sps:$4 sm:$0xff]   ;;  %v2122_v56 = vld [vmem:[%s2347_s8 + $0x94] ss:$36 sps:$4 sm:$0xff]   ;;  %v2128_v60 = vld [vmem:[%s2533_s1 + $0x160] sm:$0xff]  }
  0x19   : > { %1834 = vmatpush3.bf16.msra.mxu0 %v2080_v18  ;;  %v2112_v46 = vld [vmem:[%s2347_s8 + $0x48] ss:$36 sps:$4 sm:$0xff]   ;;  %v2117_v51 = vld [vmem:[%s2533_s1 + $0x190] sm:$0xff]   ;;  %v2127_v59 = vld [vmem:[%s2347_s8 + $0x98] ss:$36 sps:$4 sm:$0xff]  }
  0x1a   : > { %1874 = vmatpush3.bf16.msra.mxu1 %v2081_v19  ;;  %1835 = vmatprep.subr.bf16.mxu0 %v2082_v20  ;;  %v2126_v58 = vld [vmem:[%s2347_s8 + $0x90] ss:$36 sps:$4 sm:$0xff]   ;;  %v2129_v61 = vld [vmem:[%s2533_s1 + $0x1e0] sm:$0xff]   ;;  %v2132_v0 = vld [vmem:[%s2533_s1 + $0x168] sm:$0xff]  }
  0x1b   : > { %1875 = vmatprep.subr.bf16.mxu1 %v2083_v21  ;;  %v2130_v62 = vld [vmem:[%s2533_s1 + $0x120] sm:$0xff]   ;;  %v2133_v1 = vld [vmem:[%s2533_s1 + $0x1e8] sm:$0xff]   ;;  %v2140_v6 = vld [vmem:[%s2347_s8 + $0xd8] ss:$36 sps:$4 sm:$0xff]  }
  0x1c   : > { %v2131_v63 = vld [vmem:[%s2533_s1 + $0x1a0] sm:$0xff]   ;;  %v2134_v2 = vld [vmem:[%s2533_s1 + $0x128] sm:$0xff]   ;;  %v2142_v8 = vld [vmem:[%s2533_s1 + $0x170] sm:$0xff]  }
  0x1d   : > { %1836 = vmatpush3.bf16.msra.mxu0 %v2084_v22  ;;  %v2135_v3 = vld [vmem:[%s2533_s1 + $0x1a8] sm:$0xff]   ;;  %v2136_v4 = vld [vmem:[%s2347_s8 + $0xdc] ss:$36 sps:$4 sm:$0xff]   ;;  %v2143_v9 = vld [vmem:[%s2533_s1 + $0x1f0] sm:$0xff]  }
  0x1e   : > { %1876 = vmatpush3.bf16.msra.mxu1 %v2085_v23  ;;  %1837 = vmatprep.subr.bf16.mxu0 %v2086_v24  ;;  %v2138_v5 = vld [vmem:[%s2347_s8 + $0xe4] ss:$36 sps:$4 sm:$0xff]   ;;  %v2144_v10 = vld [vmem:[%s2533_s1 + $0x130] sm:$0xff]   ;;  %v2146_v12 = vld [vmem:[%s2533_s1 + $0x178] sm:$0xff]  }
  0x1f   : > { %1877 = vmatprep.subr.bf16.mxu1 %v2087_v25  ;;  %v2141_v7 = vld [vmem:[%s2347_s8 + $0xe0] ss:$36 sps:$4 sm:$0xff]   ;;  %v2145_v11 = vld [vmem:[%s2533_s1 + $0x1b0] sm:$0xff]   ;;  %v2147_v13 = vld [vmem:[%s2533_s1 + $0x1f8] sm:$0xff]  }
  0x20   : > { %v2148_v14 = vld [vmem:[%s2533_s1 + $0x138] sm:$0xff]   ;;  %v2150_v16 = vld [vmem:[%s2347_s8 + $0x10] ss:$36 sps:$4 sm:$0xff]   ;;  %v2156_v20 = vld [vmem:[%s2533_s1 + $0x200] sm:$0xff]  }
  0x21   : > { %1838 = vmatpush3.bf16.msra.mxu0 %v2088_v26  ;;  %v2149_v15 = vld [vmem:[%s2533_s1 + $0x1b8] sm:$0xff]   ;;  %v2157_v21 = vld [vmem:[%s2533_s1 + $0x208] sm:$0xff]   ;;  %v2163_v25 = vld [vmem:[%s2347_s8 + $0x60] ss:$36 sps:$4 sm:$0xff]  }
  0x22   : > { %1878 = vmatpush3.bf16.msra.mxu1 %v2089_v27  ;;  %1839 = vmatprep.subr.bf16.mxu0 %v2090_v28  ;;  %v2152_v17 = vld [vmem:[%s2347_s8 + $0x14] ss:$36 sps:$4 sm:$0xff]   ;;  %v2155_v19 = vld [vmem:[%s2347_s8 + $0x1c] ss:$36 sps:$4 sm:$0xff]   ;;  %v2160_v23 = vld [vmem:[%s2347_s8 + $0x64] ss:$36 sps:$4 sm:$0xff]  }
  0x23   : > { %1879 = vmatprep.subr.bf16.mxu1 %v2091_v29  ;;  %v2153_v18 = vld [vmem:[%s2347_s8 + $0x18] ss:$36 sps:$4 sm:$0xff]   ;;  %v2164_v26 = vld [vmem:[%s2533_s1 + $0x210] sm:$0xff]   ;;  %v2166_v27 = vld [vmem:[%s2347_s8 + $0xa4] ss:$36 sps:$4 sm:$0xff]  }
  0x24   : > { %v2158_v22 = vld [vmem:[%s2347_s8 + $0x5c] ss:$36 sps:$4 sm:$0xff]   ;;  %v2168_v28 = vld [vmem:[%s2347_s8 + $0xac] ss:$36 sps:$4 sm:$0xff]  }
  0x25   : > { %1840 = vmatpush3.bf16.msra.mxu0 %v2092_v30  ;;  %v2162_v24 = vld [vmem:[%s2347_s8 + $0x58] ss:$36 sps:$4 sm:$0xff]   ;;  %v2170_v30 = vld [vmem:[%s2347_s8 + $0xa0] ss:$36 sps:$4 sm:$0xff]   ;;  %v2174_v33 = vld [vmem:[%s2347_s8 + $0xec] ss:$36 sps:$4 sm:$0xff]  }
  0x26   : > { %1880 = vmatpush3.bf16.msra.mxu1 %v2093_v31  ;;  %1905 = vmatprep.subr.bf16.mxu0 %v2100_v36  ;;  %v2165_v29 = vld [vmem:[%s2533_s1 + $0x218] sm:$0xff]   ;;  %v2171_v31 = vld [vmem:[%s2347_s8 + $0xa8] ss:$36 sps:$4 sm:$0xff]  }
  0x27   : > { %1945 = vmatprep.subr.bf16.mxu1 %v2101_v37  ;;  %v2173_v35 = vld [vmem:[%s2533_s1 + $0x228] sm:$0xff]   ;;  %v2180_v37 = vld [vmem:[%s2533_s1 + $0x230] sm:$0xff]  }
  0x28   : > { %1126 = vmatmul.mubr.bf16.vlgmr.msra.gmra.mrb[0].mxu0 %v2094_v32  ;;  %v2172_v32 = vld [vmem:[%s2533_s1 + $0x220] sm:$0xff]   ;;  %v2178_v36 = vld [vmem:[%s2347_s8 + $0xe8] ss:$36 sps:$4 sm:$0xff]  }
  0x29   : > { %1191 = vmatmul.mubr.bf16.vlgmr.msra.gmra.mrb[0].mxu1 %v2097_v34  ;;  %1906 = vmatpush3.bf16.msra.mxu0 %v2102_v38  ;;  %v2176_v34 = vld [vmem:[%s2347_s8 + $0xf4] ss:$36 sps:$4 sm:$0xff]  }
  0x2a   : > { %1946 = vmatpush3.bf16.msra.mxu1 %v2103_v39  ;;  %1907 = vmatprep.subr.bf16.mxu0 %v2104_v40  ;;  %v2179_v38 = vld [vmem:[%s2347_s8 + $0xf0] ss:$36 sps:$4 sm:$0xff]   ;;  %v2182_v39 = vld [vmem:[%s2347_s8 + $0x20] ss:$36 sps:$4 sm:$0xff]  }
  0x2b   : > { %1947 = vmatprep.subr.bf16.mxu1 %v2105_v41  ;;  %1133 = vmatprep.mubr.bf16.mxu0 %v2108_v44  ;;  %v2183_v40 = vld [vmem:[%s2347_s8 + $0xb0] ss:$36 sps:$4 sm:$0xff]   ;;  %v2181_v41 = vld [vmem:[%s2533_s1 + $0x238] sm:$0xff]  }
  0x2c   : > { %1198 = vmatprep.mubr.bf16.mxu1 %v2110_v45 }
  0x2d   : > { %1908 = vmatpush3.bf16.msra.mxu0 %v2106_v42  ;;  %v2184_v42 = vld [vmem:[%s2347_s8 + $0x68] ss:$36 sps:$4 sm:$0xff]  }
  0x2e   : > { %1948 = vmatpush3.bf16.msra.mxu1 %v2107_v43  ;;  %1909 = vmatprep.subr.bf16.mxu0 %v2114_v48  ;;  %v2185_v43 = vld [vmem:[%s2347_s8 + $0xf8] ss:$36 sps:$4 sm:$0xff]   ;;  %s1674_s8 = sshll.u32 %s2541_s23, 2  ;;  %s1675_s23 = sshll.u32 %s2543_s12, 1 }
  0x2f   : > { %1949 = vmatprep.subr.bf16.mxu1 %v2115_v49  ;;  %s263_s11 = scalar_lea.vmem %s2534_s2, %s1674_s8  ;;  %s271_s18 = scalar_lea.vmem %s2535_s3, %s1675_s23 }
  0x30   : > { %1134 = vmatmul.mubr.bf16.gmra.mrb[4].mxu0 %v2112_v46 }
  0x31   : > { %1199 = vmatmul.mubr.bf16.gmra.mrb[4].mxu1 %v2113_v47  ;;  %1910 = vmatpush3.bf16.msra.mxu0 %v2116_v50 }
  0x32   : > { %1950 = vmatpush3.bf16.msra.mxu1 %v2117_v51  ;;  %1911 = vmatprep.subr.bf16.mxu0 %v2118_v52 }
  0x33   : > { %1951 = vmatprep.subr.bf16.mxu1 %v2119_v53  ;;  %1141 = vmatprep.mubr.bf16.mxu0 %v2122_v56 }
  0x34   : > { %1206 = vmatprep.mubr.bf16.mxu1 %v2124_v57 }
  0x35   : > { %1912 = vmatpush3.bf16.msra.mxu0 %v2120_v54 }
  0x36   : > { %1952 = vmatpush3.bf16.msra.mxu1 %v2121_v55  ;;  %1913 = vmatprep.subr.bf16.mxu0 %v2128_v60 }
  0x37   : > { %1953 = vmatprep.subr.bf16.mxu1 %v2129_v61 }
  0x38   : > { %1142 = vmatmul.mubr.bf16.gmra.mrb[8].mxu0 %v2126_v58 }
  0x39   : > { %1207 = vmatmul.mubr.bf16.gmra.mrb[8].mxu1 %v2127_v59  ;;  %1914 = vmatpush3.bf16.msra.mxu0 %v2130_v62 }
  0x3a   : > { %1954 = vmatpush3.bf16.msra.mxu1 %v2131_v63  ;;  %1915 = vmatprep.subr.bf16.mxu0 %v2132_v0 }
  0x3b   : > { %1955 = vmatprep.subr.bf16.mxu1 %v2133_v1  ;;  %1149 = vmatprep.mubr.bf16.mxu0 %v2136_v4 }
  0x3c   : > { %1214 = vmatprep.mubr.bf16.mxu1 %v2138_v5 }
  0x3d   : > { %1916 = vmatpush3.bf16.msra.mxu0 %v2134_v2 }
  0x3e   : > { %1956 = vmatpush3.bf16.msra.mxu1 %v2135_v3  ;;  %1917 = vmatprep.subr.bf16.mxu0 %v2142_v8 }
  0x3f   : > { %1957 = vmatprep.subr.bf16.mxu1 %v2143_v9 }
  0x40   : > { %1150 = vmatmul.mubr.bf16.gmra.mrb[12].mxu0 %v2140_v6 }
  0x41   : > { %1215 = vmatmul.mubr.bf16.gmra.mrb[12].mxu1 %v2141_v7  ;;  %1918 = vmatpush3.bf16.msra.mxu0 %v2144_v10 }
  0x42   : > { %1958 = vmatpush3.bf16.msra.mxu1 %v2145_v11  ;;  %1919 = vmatprep.subr.bf16.mxu0 %v2146_v12 }
  0x43   : > { %1959 = vmatprep.subr.bf16.mxu1 %v2147_v13  ;;  %1255 = vmatprep.mubr.bf16.mxu0 %v2152_v17 }
  0x44   : > { %1320 = vmatprep.mubr.bf16.mxu1 %v2155_v19 }
  0x45   : > { %1920 = vmatpush3.bf16.msra.mxu0 %v2148_v14 }
  0x46   : > { %1960 = vmatpush3.bf16.msra.mxu1 %v2149_v15  ;;  %1997 = vmatprep.subr.bf16.mxu0 %v2156_v20 }
  0x47   : > { %2021 = vmatprep.subr.bf16.mxu1 %v2156_v20 }
  0x48   : > { %1256 = vmatmul.mubr.bf16.vlgmr.msra.gmra.mrb[16].mxu0 %v2150_v16 }
  0x49   : > { %1321 = vmatmul.mubr.bf16.vlgmr.msra.gmra.mrb[16].mxu1 %v2153_v18  ;;  %1998 = vmatpush3.bf16.msra.mxu0 %v2156_v20 }
  0x4a   : > { %2029 = vmatpush3.bf16.msra.mxu1 %v2156_v20  ;;  %1999 = vmatprep.subr.bf16.mxu0 %v2157_v21 }
  0x4b   : > { %2022 = vmatprep.subr.bf16.mxu1 %v2157_v21  ;;  %1263 = vmatprep.mubr.bf16.mxu0 %v2158_v22 }
  0x4c   : > { %1328 = vmatprep.mubr.bf16.mxu1 %v2160_v23 }
  0x4d   : > { %2000 = vmatpush3.bf16.msra.mxu0 %v2157_v21 }
  0x4e   : > { %2030 = vmatpush3.bf16.msra.mxu1 %v2157_v21  ;;  %2001 = vmatprep.subr.bf16.mxu0 %v2164_v26 }
  0x4f   : > { %2023 = vmatprep.subr.bf16.mxu1 %v2164_v26 }
  0x50   : > { %1264 = vmatmul.mubr.bf16.gmra.mrb[20].mxu0 %v2162_v24 }
  0x51   : > { %1329 = vmatmul.mubr.bf16.gmra.mrb[20].mxu1 %v2163_v25  ;;  %1271 = vmatprep.mubr.bf16.mxu0 %v2166_v27 }
  0x52   : > { %2002 = vmatpush3.bf16.msra.mxu0 %v2164_v26  ;;  %1336 = vmatprep.mubr.bf16.mxu1 %v2168_v28 }
  0x53   : > { %2031 = vmatpush3.bf16.msra.mxu1 %v2164_v26  ;;  %2003 = vmatprep.subr.bf16.mxu0 %v2165_v29 }
  0x54   : > { %2024 = vmatprep.subr.bf16.mxu1 %v2165_v29 }
  0x56   : > { %2004 = vmatpush3.bf16.msra.mxu0 %v2165_v29 }
  0x57   : > { %2032 = vmatpush3.bf16.msra.mxu1 %v2165_v29  ;;  %2005 = vmatprep.subr.bf16.mxu0 %v2172_v32 }
  0x58   : > { %1272 = vmatmul.mubr.bf16.gmra.mrb[24].mxu0 %v2170_v30  ;;  %2025 = vmatprep.subr.bf16.mxu1 %v2172_v32 }
  0x59   : > { %1337 = vmatmul.mubr.bf16.gmra.mrb[24].mxu1 %v2171_v31  ;;  %1279 = vmatprep.mubr.bf16.mxu0 %v2174_v33 }
  0x5a   : > { %2006 = vmatpush3.bf16.msra.mxu0 %v2172_v32  ;;  %1344 = vmatprep.mubr.bf16.mxu1 %v2176_v34 }
  0x5b   : > { %2033 = vmatpush3.bf16.msra.mxu1 %v2172_v32  ;;  %2007 = vmatprep.subr.bf16.mxu0 %v2173_v35 }
  0x5c   : > { %2026 = vmatprep.subr.bf16.mxu1 %v2173_v35 }
  0x5e   : > { %2008 = vmatpush3.bf16.msra.mxu0 %v2173_v35 }
  0x5f   : > { %2034 = vmatpush3.bf16.msra.mxu1 %v2173_v35  ;;  %2009 = vmatprep.subr.bf16.mxu0 %v2180_v37 }
  0x60   : > { %1280 = vmatmul.mubr.bf16.gmra.mrb[28].mxu0 %v2178_v36  ;;  %2027 = vmatprep.subr.bf16.mxu1 %v2180_v37 }
  0x61   : > { %1345 = vmatmul.mubr.bf16.gmra.mrb[28].mxu1 %v2179_v38  ;;  %2013 = vmatprep.mubr.bf16.mxu0 %v2182_v39 }
  0x62   : > { %2010 = vmatpush3.bf16.msra.mxu0 %v2180_v37  ;;  %2017 = vmatprep.mubr.bf16.mxu1 %v2183_v40 }
  0x63   : > { %2035 = vmatpush3.bf16.msra.mxu1 %v2180_v37  ;;  %2011 = vmatprep.subr.bf16.mxu0 %v2181_v41 }
  0x64   : > { %2028 = vmatprep.subr.bf16.mxu1 %v2181_v41 }
  0x66   : > { %2012 = vmatpush3.bf16.msra.mxu0 %v2181_v41 }
  0x67   : > { %2036 = vmatpush3.bf16.msra.mxu1 %v2181_v41 }
  0x69   : > { %2014 = vmatmul.mubr.bf16.vlgmr.msra.gmra.mrb[32].mxu0 %v2184_v42 }
  0x6a   : > { %2018 = vmatmul.mubr.bf16.vlgmr.msra.gmra.mrb[32].mxu1 %v2185_v43 }
  0xfb   : > { %v1841_v44 = vpop.f32.mrb[0].mxu0 }
  0xfc   : > { %v1881_v45 = vpop.f32.mrb[0].mxu1  ;;  %v1842_v46 = vpop.f32.mrb[1].mxu0 }
  0xfd   : > { %v1843_v47 = vadd.f32 %v1842_v46, %v1841_v44  ;;  %v1882_v48 = vpop.f32.mrb[1].mxu1  ;;  %v1844_v49 = vpop.f32.mrb[2].mxu0 }
  0xfe   : > { %v1883_v50 = vadd.f32 %v1882_v48, %v1881_v45  ;;  %v1884_v51 = vpop.f32.mrb[2].mxu1  ;;  %v1845_v52 = vpop.f32.mrb[3].mxu0 }
  0xff   : > { %v1846_v53 = vadd.f32 %v1845_v52, %v1844_v49  ;;  %v1885_v54 = vpop.f32.mrb[3].mxu1 }
 0x100   : > { %v1193_v55 = vadd.f32 %v1883_v50, %v1843_v47  ;;  %v1886_v56 = vadd.f32 %v1885_v54, %v1884_v51 }
 0x102   : > { %v1196_v57 = vadd.f32 %v1886_v56, %v1846_v53 }
 0x103   : > { %v1847_v58 = vpop.f32.mrb[4].mxu0 }
 0x104   : > { %v1887_v59 = vpop.f32.mrb[4].mxu1  ;;  %v1848_v60 = vpop.f32.mrb[5].mxu0 }
 0x105   : > { %v1849_v61 = vadd.f32 %v1848_v60, %v1847_v58  ;;  %v1888_v62 = vpop.f32.mrb[5].mxu1  ;;  %v1850_v63 = vpop.f32.mrb[6].mxu0 }
 0x106   : > { %v1889_v0 = vadd.f32 %v1888_v62, %v1887_v59  ;;  %v1890_v1 = vpop.f32.mrb[6].mxu1  ;;  %v1851_v2 = vpop.f32.mrb[7].mxu0 }
 0x107   : > { %v1852_v3 = vadd.f32 %v1851_v2, %v1850_v63  ;;  %v1891_v4 = vpop.f32.mrb[7].mxu1 }
 0x108   : > { %v1201_v5 = vadd.f32 %v1889_v0, %v1849_v61  ;;  %v1892_v6 = vadd.f32 %v1891_v4, %v1890_v1 }
 0x10a   : > { %v1204_v7 = vadd.f32 %v1892_v6, %v1852_v3 }
 0x10b   : > { %v1853_v8 = vpop.f32.mrb[8].mxu0 }
 0x10c   : > { %v1893_v9 = vpop.f32.mrb[8].mxu1  ;;  %v1854_v10 = vpop.f32.mrb[9].mxu0 }
 0x10d   : > { %v1855_v11 = vadd.f32 %v1854_v10, %v1853_v8  ;;  %v1894_v12 = vpop.f32.mrb[9].mxu1  ;;  %v1856_v13 = vpop.f32.mrb[10].mxu0 }
 0x10e   : > { %v1895_v14 = vadd.f32 %v1894_v12, %v1893_v9  ;;  %v1896_v15 = vpop.f32.mrb[10].mxu1  ;;  %v1857_v16 = vpop.f32.mrb[11].mxu0 }
 0x10f   : > { %v1858_v17 = vadd.f32 %v1857_v16, %v1856_v13  ;;  %v1897_v18 = vpop.f32.mrb[11].mxu1 }
 0x110   : > { %v1209_v19 = vadd.f32 %v1895_v14, %v1855_v11  ;;  %v1898_v20 = vadd.f32 %v1897_v18, %v1896_v15 }
 0x112   : > { %v1212_v21 = vadd.f32 %v1898_v20, %v1858_v17 }
 0x113   : > { %v1859_v22 = vpop.f32.mrb[12].mxu0 }
 0x114   : > { %v1899_v23 = vpop.f32.mrb[12].mxu1  ;;  %v1860_v24 = vpop.f32.mrb[13].mxu0 }
 0x115   : > { %v1900_v25 = vpop.f32.mrb[13].mxu1  ;;  %v1861_v26 = vadd.f32 %v1860_v24, %v1859_v22  ;;  %v1862_v28 = vpop.f32.mrb[14].mxu0 }
 0x116   : > { %v1901_v27 = vadd.f32 %v1900_v25, %v1899_v23  ;;  %v1902_v29 = vpop.f32.mrb[14].mxu1  ;;  %v1863_v30 = vpop.f32.mrb[15].mxu0 }
 0x117   : > { %v1903_v31 = vpop.f32.mrb[15].mxu1  ;;  %v1864_v33 = vadd.f32 %v1863_v30, %v1862_v28 }
 0x118   : > { %v1217_v32 = vadd.f32 %v1901_v27, %v1861_v26  ;;  %v1904_v34 = vadd.f32 %v1903_v31, %v1902_v29 }
 0x11a   : > { %v1220_v35 = vadd.f32 %v1904_v34, %v1864_v33 }
 0x11b   : > { %v1921_v36 = vpop.f32.mrb[16].mxu0 }
 0x11c   : > { %v1922_v37 = vpop.f32.mrb[17].mxu0  ;;  %v1961_v40 = vpop.f32.mrb[16].mxu1 }
 0x11d   : > { %v1923_v38 = vadd.f32 %v1922_v37, %v1921_v36  ;;  %v1924_v39 = vpop.f32.mrb[18].mxu0  ;;  %v1962_v42 = vpop.f32.mrb[17].mxu1 }
 0x11e   : > { %v1925_v41 = vpop.f32.mrb[19].mxu0  ;;  %v1963_v45 = vadd.f32 %v1962_v42, %v1961_v40  ;;  %v1964_v46 = vpop.f32.mrb[18].mxu1 }
 0x11f   : > { %v1258_v43 = vadd.f32 %v1923_v38, %v1193_v55  ;;  %v1926_v44 = vadd.f32 %v1925_v41, %v1924_v39  ;;  %v1965_v47 = vpop.f32.mrb[19].mxu1 }
 0x120   : > { %v1966_v49 = vadd.f32 %v1965_v47, %v1964_v46 }
 0x121   : > { %v1261_v48 = vadd.f32 %v1926_v44, %v1196_v57  ;;  %v1323_v50 = vadd.f32 %v1963_v45, %v1258_v43 }
 0x123   : > { %v1927_v51 = vpop.f32.mrb[20].mxu0  ;;  %v2511_v52 = vadd.f32 %v1966_v49, %v1261_v48 }
 0x124   : > { %v1928_v53 = vpop.f32.mrb[21].mxu0  ;;  %v1967_v58 = vpop.f32.mrb[20].mxu1 }
 0x125   : > { %v1929_v54 = vadd.f32 %v1928_v53, %v1927_v51  ;;  %v1930_v56 = vpop.f32.mrb[22].mxu0  ;;  %v1968_v60 = vpop.f32.mrb[21].mxu1 }
 0x126   : > { %v1931_v59 = vpop.f32.mrb[23].mxu0  ;;  %v1969_v63 = vadd.f32 %v1968_v60, %v1967_v58  ;;  %v1970_v55 = vpop.f32.mrb[22].mxu1 }
 0x127   : > { %v1266_v61 = vadd.f32 %v1929_v54, %v1201_v5  ;;  %v1932_v62 = vadd.f32 %v1931_v59, %v1930_v56  ;;  %v1971_v0 = vpop.f32.mrb[23].mxu1 }
 0x128   : > { %v1972_v2 = vadd.f32 %v1971_v0, %v1970_v55 }
 0x129   : > { %v1269_v1 = vadd.f32 %v1932_v62, %v1204_v7  ;;  %v1331_v3 = vadd.f32 %v1969_v63, %v1266_v61 }
 0x12b   : > { %v1933_v57 = vpop.f32.mrb[24].mxu0  ;;  %v1334_v4 = vadd.f32 %v1972_v2, %v1269_v1 }
 0x12c   : > { %v1934_v6 = vpop.f32.mrb[25].mxu0  ;;  %v1973_v10 = vpop.f32.mrb[24].mxu1 }
 0x12d   : > { %v1935_v8 = vadd.f32 %v1934_v6, %v1933_v57  ;;  %v1936_v9 = vpop.f32.mrb[26].mxu0  ;;  %v1974_v12 = vpop.f32.mrb[25].mxu1 }
 0x12e   : > { %v1937_v11 = vpop.f32.mrb[27].mxu0  ;;  %v1975_v15 = vadd.f32 %v1974_v12, %v1973_v10  ;;  %v1976_v16 = vpop.f32.mrb[26].mxu1 }
 0x12f   : > { %v1274_v13 = vadd.f32 %v1935_v8, %v1209_v19  ;;  %v1938_v14 = vadd.f32 %v1937_v11, %v1936_v9  ;;  %v1977_v5 = vpop.f32.mrb[27].mxu1 }
 0x130   : > { %v1978_v18 = vadd.f32 %v1977_v5, %v1976_v16 }
 0x131   : > { %v1277_v17 = vadd.f32 %v1938_v14, %v1212_v21  ;;  %v1339_v20 = vadd.f32 %v1975_v15, %v1274_v13 }
 0x133   : > { %v1939_v22 = vpop.f32.mrb[28].mxu0  ;;  %v1342_v7 = vadd.f32 %v1978_v18, %v1277_v17 }
 0x134   : > { %v1940_v23 = vpop.f32.mrb[29].mxu0  ;;  %v1979_v26 = vpop.f32.mrb[28].mxu1 }
 0x135   : > { %v1941_v24 = vadd.f32 %v1940_v23, %v1939_v22  ;;  %v1942_v25 = vpop.f32.mrb[30].mxu0  ;;  %v1980_v28 = vpop.f32.mrb[29].mxu1 }
 0x136   : > { %v1943_v27 = vpop.f32.mrb[31].mxu0  ;;  %v1981_v31 = vadd.f32 %v1980_v28, %v1979_v26  ;;  %v1982_v19 = vpop.f32.mrb[30].mxu1 }
 0x137   : > { %v1282_v29 = vadd.f32 %v1941_v24, %v1217_v32  ;;  %v1944_v30 = vadd.f32 %v1943_v27, %v1942_v25  ;;  %v1983_v33 = vpop.f32.mrb[31].mxu1 }
 0x138   : > { %v1984_v36 = vadd.f32 %v1983_v33, %v1982_v19 }
 0x139   : > { %v1285_v34 = vadd.f32 %v1944_v30, %v1220_v35  ;;  %v1347_v37 = vadd.f32 %v1981_v31, %v1282_v29 }
 0x13b   : > { %v1350_v21 = vadd.f32 %v1984_v36, %v1285_v34 }
 0x13c   : > { %v2015_v38 = vpop.f32.mrb[32].mxu0 }
 0x13d   : > { %v1396_v39 = vadd.f32 %v2015_v38, %v1331_v3  ;;  %v2019_v40 = vpop.f32.mrb[32].mxu1  ;;  %v1387_v41 = vpop.f32.mrb[33].mxu0 }
 0x13e   : > { %v1412_v42 = vadd.f32 %v2019_v40, %v1347_v37  ;;  %v1388_v43 = vadd.f32 %v1387_v41, %v1323_v50  ;;  %v1403_v44 = vpop.f32.mrb[33].mxu1  ;;  %v2016_v45 = vpop.f32.mrb[34].mxu0 }
 0x13f   : > { %v1404_v46 = vadd.f32 %v1403_v44, %v1339_v20  ;;  %v1399_v47 = vadd.f32 %v2016_v45, %v1334_v4  ;;  %v2020_v32 = vpop.f32.mrb[34].mxu1  ;;  %v1390_v48 = vpop.f32.mrb[35].mxu0  ;;  %v1500_v63 = vmul.f32 %v1396_v39, %v1396_v39 }
 0x140   : > { %v1415_v35 = vadd.f32 %v2020_v32, %v1350_v21  ;;  %v1391_v49 = vadd.f32 %v1390_v48, %v2511_v52  ;;  %v1406_v51 = vpop.f32.mrb[35].mxu1  ;;  %v1498_v50 = vmul.f32 %v1388_v43, %v1388_v43  ;;  %v1504_v10 = vmul.f32 %v1412_v42, %v1412_v42 }
 0x141   : > { %v1810_v53 = vpack.c.bf16 %v1399_v47, %v1396_v39  ;;  %v1407_v54 = vadd.f32 %v1406_v51, %v1342_v7  ;;  %v1501_v1 = vmul.f32 %v1399_v47, %v1399_v47  ;;  %v1502_v3 = vmul.f32 %v1404_v46, %v1404_v46 }
 0x142   : > { %v1820_v56 = vpack.c.bf16 %v1415_v35, %v1412_v42  ;;  %v1805_v58 = vpack.c.bf16 %v1391_v49, %v1388_v43  ;;  %v1485_v59 = vadd.f32 %v1391_v49, %v1388_v43  ;;  %v1499_v60 = vmul.f32 %v1391_v49, %v1391_v49 }
 0x143   : > { %1822 = vst [vmem:[%s263_s11 + $0x8] sm:$0xff] %v1810_v53   ;;  %v1815_v61 = vpack.c.bf16 %v1407_v54, %v1404_v46  ;;  %v1503_v6 = vmul.f32 %v1407_v54, %v1407_v54  ;;  %v1505_v13 = vmul.f32 %v1415_v35, %v1415_v35 }
 0x144   : > { %1824 = vst [vmem:[%s263_s11 + $0x18] sm:$0xff] %v1820_v56   ;;  %1806 = vst [vmem:[%s263_s11] sm:$0xff] %v1805_v58   ;;  %v1486_v62 = vadd.f32 %v1485_v59, %v1396_v39  ;;  %v1506_v55 = vadd.f32 %v1499_v60, %v1498_v50 }
 0x145   : > { %1823 = vst [vmem:[%s263_s11 + $0x10] sm:$0xff] %v1815_v61  }
 0x146   : > { %v1487_v0 = vadd.f32 %v1486_v62, %v1399_v47  ;;  %v1507_v52 = vadd.f32 %v1506_v55, %v1500_v63 }
 0x148   : > { %v1488_v2 = vadd.f32 %v1487_v0, %v1404_v46  ;;  %v1508_v57 = vadd.f32 %v1507_v52, %v1501_v1 }
 0x14a   : > { %v1489_v4 = vadd.f32 %v1488_v2, %v1407_v54  ;;  %v1509_v8 = vadd.f32 %v1508_v57, %v1502_v3 }
 0x14c   : > { %v1490_v9 = vadd.f32 %v1489_v4, %v1412_v42  ;;  %v1510_v11 = vadd.f32 %v1509_v8, %v1503_v6 }
 0x14e   : > { %v1491_v12 = vadd.f32 %v1490_v9, %v1415_v35  ;;  %v1511_v14 = vadd.f32 %v1510_v11, %v1504_v10 }
 0x150   : > { %v1492_v15 = vrot.slane %v1491_v12, 4  ;;  %v1512_v16 = vadd.f32 %v1511_v14, %v1505_v13 }
 0x152   : > { %v1493_v5 = vadd.f32 %v1492_v15, %v1491_v12  ;;  %v1513_v17 = vrot.slane %v1512_v16, 4 }
 0x154   : > { %v1494_v18 = vrot.slane %v1493_v5, 2  ;;  %v1514_v20 = vadd.f32 %v1513_v17, %v1512_v16 }
 0x156   : > { %v1495_v22 = vadd.f32 %v1494_v18, %v1493_v5  ;;  %v1515_v7 = vrot.slane %v1514_v20, 2 }
 0x158   : > { %v1496_v23 = vrot.slane %v1495_v22, 1  ;;  %v1516_v24 = vadd.f32 %v1515_v7, %v1514_v20 }
 0x15a   : > { %v1517_v25 = vrot.slane %v1516_v24, 1  ;;  %v1497_v26 = vadd.f32 %v1496_v23, %v1495_v22 }
 0x15c   : > { %v1518_v27 = vadd.f32 %v1517_v25, %v1516_v24 }
 0x15e   : > { %v1520_v28 = vsel %vm1519_vm0, %v1497_v26, %v1518_v27 }
 0x15f   : > { %1521 = vst [vmem:[%s271_s18] sm:$0x3] %v1520_v28 }
 0x160 PF: > { %s14_s14 = sadd.s32 1, %s2208_s14   ;;  %s2536_s12 = smov %s2204_s13 }
 0x161   : > { %p11_p6 = scmp.ge.s32.totalorder %s14_s14, 4   ;;  %s2537_s13 = smov %s2539_s15 }
 0x163   :  { %13 = sbr.rel (!%p11_p6) target bundleno = 2 (0x2), region = 81 }

</bundles_post_ra>
